<compile_context>
chip_gen: v7x
topology: tpu7x:2x2x1
jax: 0.10.0
libtpu: 0.0.40
codegen_flags: <defaults>
</compile_context>

<pallas_src>
import jax
import jax.numpy as jnp
from jax import lax
from jax.experimental import pallas as pl
from jax.experimental.pallas import tpu as pltpu


def _make_vq_kernel(E, C, HW, TN, total_elems):
    """Builds the per-tile kernel. Static shapes are closed over (E, C, HW, TN)."""

    def kernel(x_ref, w_ref, q_ref, idx_ref, usage_ref, loss_ref,
               counts_ref, sqerr_ref):
        # x_ref   : (C, TN)  f32 VMEM   spatial tile (channels on sublanes, pixels on lanes)
        # w_ref   : (E, C)   f32 VMEM   codebook (resident across the whole grid)
        # q_ref   : (C, TN)  f32 VMEM   quantized tile (lane-dense)
        # idx_ref : (1, TN)  i32 VMEM   nearest-code indices (lane-dense)
        # usage_ref, loss_ref : (1,) f32 SMEM scalar outputs (written once, last step)
        # counts_ref : (E, 1) f32 VMEM scratch, running per-code counts
        # sqerr_ref  : (1,)   f32 SMEM scratch, running squared error
        b = pl.program_id(0)
        t = pl.program_id(1)
        is_first = jnp.logical_and(b == 0, t == 0)
        is_last = jnp.logical_and(b == pl.num_programs(0) - 1,
                                  t == pl.num_programs(1) - 1)

        @pl.when(is_first)
        def _():
            counts_ref[...] = jnp.zeros_like(counts_ref)
            sqerr_ref[0] = jnp.float32(0.0)

        x_t = x_ref[...]                                   # (C, TN)
        w = w_ref[...]                                     # (E, C)

        # --- squared euclidean distance on the VPU (C is tiny; a K=C MXU matmul would be
        # --- degenerate).  Direct (w - x)^2 form: no cancellation vs. the expansion.
        dist2 = jnp.zeros((E, TN), jnp.float32)
        for c in range(C):                                 # static unroll (C is small)
            diff = w[:, c:c + 1] - x_t[c:c + 1, :]         # (E,1)-(1,TN) -> (E,TN)
            dist2 = dist2 + diff * diff

        # --- argmin over the codebook axis (first occurrence, like torch.argmin).
        # NaN inputs would yield idx == E (all-zero onehot / zero quantize), same as before.
        min_val = jnp.min(dist2, axis=0, keepdims=True)    # (1, TN)
        row = lax.broadcasted_iota(jnp.int32, (E, TN), 0)  # (E, TN)
        idx = jnp.min(jnp.where(dist2 == min_val, row, E),
                      axis=0, keepdims=True)               # (1, TN) i32
        idx_ref[...] = idx

        # --- one-hot gather of the nearest codes on the MXU (K = E contraction).
        onehot = (row == idx).astype(jnp.float32)          # (E, TN)
        q_t = lax.dot_general(w, onehot,
                              dimension_numbers=(((0,), (0,)), ((), ())),
                              preferred_element_type=jnp.float32)   # (C, TN)
        q_ref[...] = q_t

        # --- running statistics (mask lanes past HW on a ragged last tile).
        lane = lax.broadcasted_iota(jnp.int32, (1, TN), 1)
        valid = (t * TN + lane) < HW                       # (1, TN) bool
        onehot_v = jnp.where(valid, onehot, 0.0)
        counts_ref[...] += jnp.sum(onehot_v, axis=1, keepdims=True)   # (E, 1)
        diff_q = q_t - x_t
        sqerr_ref[0] += jnp.sum(jnp.where(valid, diff_q * diff_q, 0.0))

        @pl.when(is_last)
        def _():
            zero_cnt = jnp.sum((counts_ref[...] == 0.0).astype(jnp.float32))
            usage_ref[0] = 100.0 * zero_cnt / jnp.float32(E)
            loss_ref[0] = sqerr_ref[0] / jnp.float32(total_elems)

    return kernel


def vector_quantize(x_nchw, codebook_weight, commitment_weight=1.0,
                    training=True, tn=128):
    """Pallas forward for VectorQuantizer(dim=C, num_embeddings=E, distance='euclidean')."""
    B, C, H, W = x_nchw.shape
    E, Cd = codebook_weight.shape
    assert Cd == C
    HW = H * W
    tn = min(tn, HW)
    assert tn % 128 == 0 or tn == HW, "spatial tile must be lane-aligned (multiple of 128)"
    num_tiles = pl.cdiv(HW, tn)

    # NCHW -> (B, C, H*W) is a free reshape: no HBM transpose anywhere in the wrapper.
    x_flat = x_nchw.astype(jnp.float32).reshape(B, C, HW)
    w = codebook_weight.astype(jnp.float32)

    kernel = _make_vq_kernel(E, C, HW, tn, B * HW * C)

    # TODO(synk): for very large codebooks, tile the E axis too (running min/argmin carry)
    # and/or emit per-tile partial counts with a "parallel" N axis for v7x dual-TC.
    grid_spec = pltpu.PrefetchScalarGridSpec(
        num_scalar_prefetch=0,
        grid=(B, num_tiles),
        in_specs=[
            pl.BlockSpec((None, C, tn), lambda b, t: (b, 0, t)),   # x tile (C, TN)
            pl.BlockSpec((E, C), lambda b, t: (0, 0)),             # codebook stays resident
        ],
        out_specs=(
            pl.BlockSpec((None, C, tn), lambda b, t: (b, 0, t)),   # quantize tile (C, TN)
            pl.BlockSpec((None, 1, tn), lambda b, t: (b, 0, t)),   # indices (1, TN), lane-dense
            pl.BlockSpec(memory_space=pltpu.MemorySpace.SMEM),     # code_usage scalar
            pl.BlockSpec(memory_space=pltpu.MemorySpace.SMEM),     # mse scalar
        ),
        scratch_shapes=[
            pltpu.VMEM((E, 1), jnp.float32),   # running per-code counts
            pltpu.SMEM((1,), jnp.float32),     # running squared error
        ],
    )

    q_flat, idx_flat, usage, mse = pl.pallas_call(
        kernel,
        grid_spec=grid_spec,
        out_shape=(
            jax.ShapeDtypeStruct((B, C, HW), jnp.float32),
            jax.ShapeDtypeStruct((B, 1, HW), jnp.int32),
            jax.ShapeDtypeStruct((1,), jnp.float32),
            jax.ShapeDtypeStruct((1,), jnp.float32),
        ),
        compiler_params=pltpu.CompilerParams(
            # scalar/count accumulators are carried across the whole grid -> sequential.
            dimension_semantics=("arbitrary", "arbitrary")),
        cost_estimate=pl.CostEstimate(
            flops=int(B * HW * E * (5 * C + 6)),
            transcendentals=0,
            bytes_accessed=int(4 * (2 * B * C * HW + B * HW + E * C))),
    )(x_flat, w)

    quantize = q_flat.reshape(B, C, H, W)        # free reshape
    embed_idx = idx_flat.reshape(B, H, W)        # free reshape
    if training and commitment_weight > 0:
        loss = mse * jnp.float32(commitment_weight)
    else:
        loss = jnp.zeros((1,), jnp.float32)
    code_usage = usage[0]
    return quantize, embed_idx, loss, code_usage


if __name__ == "__main__":
    # VectorQuantizer(dim=4, num_embeddings=128) on input x: (2, 4, 16, 16) NCHW
    B, C, H, W = 2, 4, 16, 16
    E = 128

    key = jax.random.PRNGKey(0)
    kx, kw = jax.random.split(key)
    x = jax.random.normal(kx, (B, C, H, W), dtype=jnp.float32)
    # deterministic init matching nn.Embedding.weight.data.uniform_(-1/E, 1/E)
    weight = jax.random.uniform(kw, (E, C), dtype=jnp.float32,
                                minval=-1.0 / E, maxval=1.0 / E)

    quantize, embed_idx, loss, code_usage = jax.block_until_ready(
        vector_quantize(x, weight, commitment_weight=1.0, training=True, tn=128))

    # ---------------- pure-JAX reference checks (test-only code; may transpose) ----------
    xf = jnp.transpose(x, (0, 2, 3, 1)).reshape(-1, C)
    d2 = jnp.zeros((xf.shape[0], E), jnp.float32)
    for c in range(C):
        diff = xf[:, c:c + 1] - weight[None, :, c]
        d2 = d2 + diff * diff
    ref_idx = jnp.argmin(d2, axis=-1).astype(jnp.int32)

    got_idx = embed_idx.reshape(-1)
    # kernel's pick must be a true argmin of the distance matrix (up to fp tolerance) ...
    picked = jnp.take_along_axis(d2, got_idx[:, None], axis=-1)[:, 0]
    assert bool(jnp.all(picked <= d2.min(axis=-1) + 1e-5))
    # ... and agree with the reference except possibly on floating-point near-ties.
    assert float(jnp.mean((got_idx == ref_idx).astype(jnp.float32))) > 0.99

    # quantize must be exactly the selected codebook rows
    q_check = jnp.transpose(quantize, (0, 2, 3, 1)).reshape(-1, C)
    assert bool(jnp.allclose(q_check, weight[got_idx], atol=1e-6))

    # loss == commitment_weight * mse(quantize, x); code_usage from bincount
    ref_mse = jnp.mean((q_check - xf) ** 2)
    assert bool(jnp.allclose(loss[0], ref_mse, rtol=1e-4, atol=1e-7))
    counts = jnp.bincount(got_idx, length=E)
    ref_usage = 100.0 * jnp.sum((counts == 0)).astype(jnp.float32) / E
    assert bool(jnp.allclose(code_usage, ref_usage))

    assert quantize.shape == (B, C, H, W)
    assert embed_idx.shape == (B, H, W)
    assert loss.shape == (1,)

    print("KERNEL_OK")
</pallas_src>

<mosaic_0001>
module attributes {stable_mosaic.version = 11 : i64} {
  func.func @kernel(%arg0: i32, %arg1: i32, %arg2: memref<1x4x128xf32, #tpu.memory_space<vmem>>, %arg3: memref<128x4xf32, #tpu.memory_space<vmem>>, %arg4: memref<1x4x128xf32, #tpu.memory_space<vmem>>, %arg5: memref<1x1x128xi32, #tpu.memory_space<vmem>>, %arg6: memref<1xf32, #tpu.memory_space<smem>>, %arg7: memref<1xf32, #tpu.memory_space<smem>>, %arg8: memref<128x1xf32, #tpu.memory_space<vmem>>, %arg9: memref<1xf32, #tpu.memory_space<smem>>) attributes {dimension_semantics = [#tpu.dimension_semantics<arbitrary>, #tpu.dimension_semantics<arbitrary>], iteration_bounds = array<i64: 2, 2>, scalar_prefetch = 0 : i64, scratch_operands = 2 : i64, tpu.core_type = #tpu.core_type<tc>, window_params = [{transform_indices = @transform_0, window_bounds = array<i64: 1, 4, 128>}, {pipeline_mode = #tpu.pipeline_mode<synchronous>, transform_indices = @transform_1, window_bounds = array<i64: 128, 4>}, {transform_indices = @transform_2, window_bounds = array<i64: 1, 4, 128>}, {transform_indices = @transform_3, window_bounds = array<i64: 1, 1, 128>}, {transform_indices = @transform_4, window_bounds = array<i64: 1>}, {transform_indices = @transform_5, window_bounds = array<i64: 1>}]} {
    %c0_i32 = arith.constant 0 : i32
    %0 = arith.cmpi eq, %arg0, %c0_i32 : i32
    %c0_i32_0 = arith.constant 0 : i32
    %1 = arith.cmpi eq, %arg1, %c0_i32_0 : i32
    %2 = arith.andi %0, %1 : i1
    %c1_i32 = arith.constant 1 : i32
    %3 = arith.cmpi eq, %arg0, %c1_i32 : i32
    %c1_i32_1 = arith.constant 1 : i32
    %4 = arith.cmpi eq, %arg1, %c1_i32_1 : i32
    %5 = arith.andi %3, %4 : i1
    %6 = arith.extui %2 : i1 to i32
    %c0_i32_2 = arith.constant 0 : i32
    %7 = arith.cmpi ne, %6, %c0_i32_2 : i32
    scf.if %7 {
      %cst_28 = arith.constant 0.000000e+00 : f32
      %90 = vector.broadcast %cst_28 : f32 to vector<128x1xf32>
      %c0_29 = arith.constant 0 : index
      %c0_30 = arith.constant 0 : index
      %91 = vector.load %arg8[%c0_29, %c0_30] : memref<128x1xf32, #tpu.memory_space<vmem>>, vector<128x1xf32>
      tpu.vector_store %arg8[%c0_29, %c0_30], %90 {strides = array<i32>} : memref<128x1xf32, #tpu.memory_space<vmem>>, vector<128x1xf32>,
      %cst_31 = arith.constant 0.000000e+00 : f32
      %c0_32 = arith.constant 0 : index
      %92 = memref.load %arg9[%c0_32] : memref<1xf32, #tpu.memory_space<smem>>
      memref.store %cst_31, %arg9[%c0_32] : memref<1xf32, #tpu.memory_space<smem>>
    } else {
    }
    %c0 = arith.constant 0 : index
    %c0_3 = arith.constant 0 : index
    %c0_4 = arith.constant 0 : index
    %8 = vector.load %arg2[%c0, %c0_3, %c0_4] : memref<1x4x128xf32, #tpu.memory_space<vmem>>, vector<1x4x128xf32>
    %9 = vector.shape_cast %8 : vector<1x4x128xf32> to vector<4x128xf32>
    %c0_5 = arith.constant 0 : index
    %c0_6 = arith.constant 0 : index
    %10 = vector.load %arg3[%c0_5, %c0_6] : memref<128x4xf32, #tpu.memory_space<vmem>>, vector<128x4xf32>
    %cst = arith.constant 0.000000e+00 : f32
    %11 = vector.broadcast %cst : f32 to vector<128x128xf32>
    %12 = vector.extract_strided_slice %10 {offsets = [0, 0], sizes = [128, 1], strides = [1, 1]} : vector<128x4xf32> to vector<128x1xf32>
    %13 = vector.extract_strided_slice %9 {offsets = [0, 0], sizes = [1, 128], strides = [1, 1]} : vector<4x128xf32> to vector<1x128xf32>
    %14 = vector.broadcast %12 : vector<128x1xf32> to vector<128x128xf32>
    %15 = vector.broadcast %13 : vector<1x128xf32> to vector<128x128xf32>
    %16 = arith.subf %14, %15 : vector<128x128xf32>
    %17 = arith.mulf %16, %16 : vector<128x128xf32>
    %18 = arith.addf %11, %17 : vector<128x128xf32>
    %19 = vector.extract_strided_slice %10 {offsets = [0, 1], sizes = [128, 1], strides = [1, 1]} : vector<128x4xf32> to vector<128x1xf32>
    %20 = vector.extract_strided_slice %9 {offsets = [1, 0], sizes = [1, 128], strides = [1, 1]} : vector<4x128xf32> to vector<1x128xf32>
    %21 = vector.broadcast %19 : vector<128x1xf32> to vector<128x128xf32>
    %22 = vector.broadcast %20 : vector<1x128xf32> to vector<128x128xf32>
    %23 = arith.subf %21, %22 : vector<128x128xf32>
    %24 = arith.mulf %23, %23 : vector<128x128xf32>
    %25 = arith.addf %18, %24 : vector<128x128xf32>
    %26 = vector.extract_strided_slice %10 {offsets = [0, 2], sizes = [128, 1], strides = [1, 1]} : vector<128x4xf32> to vector<128x1xf32>
    %27 = vector.extract_strided_slice %9 {offsets = [2, 0], sizes = [1, 128], strides = [1, 1]} : vector<4x128xf32> to vector<1x128xf32>
    %28 = vector.broadcast %26 : vector<128x1xf32> to vector<128x128xf32>
    %29 = vector.broadcast %27 : vector<1x128xf32> to vector<128x128xf32>
    %30 = arith.subf %28, %29 : vector<128x128xf32>
    %31 = arith.mulf %30, %30 : vector<128x128xf32>
    %32 = arith.addf %25, %31 : vector<128x128xf32>
    %33 = vector.extract_strided_slice %10 {offsets = [0, 3], sizes = [128, 1], strides = [1, 1]} : vector<128x4xf32> to vector<128x1xf32>
    %34 = vector.extract_strided_slice %9 {offsets = [3, 0], sizes = [1, 128], strides = [1, 1]} : vector<4x128xf32> to vector<1x128xf32>
    %35 = vector.broadcast %33 : vector<128x1xf32> to vector<128x128xf32>
    %36 = vector.broadcast %34 : vector<1x128xf32> to vector<128x128xf32>
    %37 = arith.subf %35, %36 : vector<128x128xf32>
    %38 = arith.mulf %37, %37 : vector<128x128xf32>
    %39 = arith.addf %32, %38 : vector<128x128xf32>
    %cst_7 = arith.constant dense<0x7F800000> : vector<128xf32>
    %40 = vector.multi_reduction <minimumf>, %39, %cst_7 [0] : vector<128x128xf32> to vector<128xf32>
    %41 = vector.shape_cast %40 : vector<128xf32> to vector<1x128xf32>
    %42 = tpu.iota {dimensions = array<i32: 0>} : vector<128x128xi32>
    %43 = vector.broadcast %41 : vector<1x128xf32> to vector<128x128xf32>
    %44 = arith.cmpf oeq, %39, %43 : vector<128x128xf32>
    %c128_i32 = arith.constant 128 : i32
    %45 = vector.broadcast %c128_i32 : i32 to vector<128x128xi32>
    %46 = arith.select %44, %42, %45 : vector<128x128xi1>, vector<128x128xi32>
    %cst_8 = arith.constant dense<2147483647> : vector<128xi32>
    %47 = vector.multi_reduction <minsi>, %46, %cst_8 [0] : vector<128x128xi32> to vector<128xi32>
    %48 = vector.shape_cast %47 : vector<128xi32> to vector<1x128xi32>
    %c0_9 = arith.constant 0 : index
    %c0_10 = arith.constant 0 : index
    %c0_11 = arith.constant 0 : index
    %49 = vector.load %arg5[%c0_9, %c0_10, %c0_11] : memref<1x1x128xi32, #tpu.memory_space<vmem>>, vector<1x1x128xi32>
    %50 = vector.shape_cast %49 : vector<1x1x128xi32> to vector<1x128xi32>
    %51 = vector.shape_cast %48 : vector<1x128xi32> to vector<1x1x128xi32>
    tpu.vector_store %arg5[%c0_9, %c0_10, %c0_11], %51 {strides = array<i32>} : memref<1x1x128xi32, #tpu.memory_space<vmem>>, vector<1x1x128xi32>,
    %52 = vector.broadcast %48 : vector<1x128xi32> to vector<128x128xi32>
    %53 = arith.cmpi eq, %42, %52 : vector<128x128xi32>
    %54 = arith.extui %53 : vector<128x128xi1> to vector<128x128xi32>
    %55 = arith.sitofp %54 : vector<128x128xi32> to vector<128x128xf32>
    %cst_12 = arith.constant dense<0.000000e+00> : vector<4x128xf32>
    %56 = tpu.matmul %10, %55, %cst_12 {dimension_numbers = #tpu.dot_dimension_numbers<[0], [0], [1], [1], [0, 1, 1, 1], [], []>} : vector<128x4xf32>, vector<128x128xf32>, vector<4x128xf32> -> vector<4x128xf32>
    %c0_13 = arith.constant 0 : index
    %c0_14 = arith.constant 0 : index
    %c0_15 = arith.constant 0 : index
    %57 = vector.load %arg4[%c0_13, %c0_14, %c0_15] : memref<1x4x128xf32, #tpu.memory_space<vmem>>, vector<1x4x128xf32>
    %58 = vector.shape_cast %57 : vector<1x4x128xf32> to vector<4x128xf32>
    %59 = vector.shape_cast %56 : vector<4x128xf32> to vector<1x4x128xf32>
    tpu.vector_store %arg4[%c0_13, %c0_14, %c0_15], %59 {strides = array<i32>} : memref<1x4x128xf32, #tpu.memory_space<vmem>>, vector<1x4x128xf32>,
    %60 = tpu.iota {dimensions = array<i32: 1>} : vector<1x128xi32>
    %c128_i32_16 = arith.constant 128 : i32
    %61 = arith.muli %arg1, %c128_i32_16 : i32
    %62 = vector.broadcast %61 : i32 to vector<1x128xi32>
    %63 = arith.addi %62, %60 : vector<1x128xi32>
    %c256_i32 = arith.constant 256 : i32
    %64 = vector.broadcast %c256_i32 : i32 to vector<1x128xi32>
    %65 = arith.cmpi slt, %63, %64 : vector<1x128xi32>
    %cst_17 = arith.constant 0.000000e+00 : f32
    %66 = vector.shape_cast %65 : vector<1x128xi1> to vector<1x128xi1>
    %67 = vector.broadcast %66 : vector<1x128xi1> to vector<128x128xi1>
    %68 = vector.broadcast %cst_17 : f32 to vector<128x128xf32>
    %69 = arith.select %67, %55, %68 : vector<128x128xi1>, vector<128x128xf32>
    %c0_18 = arith.constant 0 : index
    %c0_19 = arith.constant 0 : index
    %70 = vector.load %arg8[%c0_18, %c0_19] : memref<128x1xf32, #tpu.memory_space<vmem>>, vector<128x1xf32>
    %cst_20 = arith.constant dense<0.000000e+00> : vector<128xf32>
    %71 = vector.multi_reduction <add>, %69, %cst_20 [1] : vector<128x128xf32> to vector<128xf32>
    %72 = vector.shape_cast %71 : vector<128xf32> to vector<128x1xf32>
    %73 = arith.addf %70, %72 : vector<128x1xf32>
    %c0_21 = arith.constant 0 : index
    %c0_22 = arith.constant 0 : index
    %74 = vector.load %arg8[%c0_21, %c0_22] : memref<128x1xf32, #tpu.memory_space<vmem>>, vector<128x1xf32>
    tpu.vector_store %arg8[%c0_21, %c0_22], %73 {strides = array<i32>} : memref<128x1xf32, #tpu.memory_space<vmem>>, vector<128x1xf32>,
    %75 = arith.subf %56, %9 : vector<4x128xf32>
    %c0_23 = arith.constant 0 : index
    %76 = memref.load %arg9[%c0_23] : memref<1xf32, #tpu.memory_space<smem>>
    %77 = arith.mulf %75, %75 : vector<4x128xf32>
    %cst_24 = arith.constant 0.000000e+00 : f32
    %78 = vector.shape_cast %65 : vector<1x128xi1> to vector<1x128xi1>
    %79 = vector.broadcast %78 : vector<1x128xi1> to vector<4x128xi1>
    %80 = vector.broadcast %cst_24 : f32 to vector<4x128xf32>
    %81 = arith.select %79, %77, %80 : vector<4x128xi1>, vector<4x128xf32>
    %82 = vector.shape_cast %81 : vector<4x128xf32> to vector<1x4x128xf32>
    %cst_25 = arith.constant dense<0.000000e+00> : vector<1xf32>
    %83 = vector.multi_reduction <add>, %82, %cst_25 [1, 2] : vector<1x4x128xf32> to vector<1xf32>
    %84 = vector.shape_cast %83 : vector<1xf32> to vector<1x1x1xf32>
    %85 = vector.extract %84[0, 0, 0] : f32 from vector<1x1x1xf32>
    %86 = arith.addf %76, %85 : f32
    %c0_26 = arith.constant 0 : index
    %87 = memref.load %arg9[%c0_26] : memref<1xf32, #tpu.memory_space<smem>>
    memref.store %86, %arg9[%c0_26] : memref<1xf32, #tpu.memory_space<smem>>
    %88 = arith.extui %5 : i1 to i32
    %c0_i32_27 = arith.constant 0 : i32
    %89 = arith.cmpi ne, %88, %c0_i32_27 : i32
    scf.if %89 {
      %c0_28 = arith.constant 0 : index
      %c0_29 = arith.constant 0 : index
      %90 = vector.load %arg8[%c0_28, %c0_29] : memref<128x1xf32, #tpu.memory_space<vmem>>, vector<128x1xf32>
      %cst_30 = arith.constant 0.000000e+00 : f32
      %91 = vector.broadcast %cst_30 : f32 to vector<128x1xf32>
      %92 = arith.cmpf oeq, %90, %91 : vector<128x1xf32>
      %93 = arith.extui %92 : vector<128x1xi1> to vector<128x1xi32>
      %94 = arith.sitofp %93 : vector<128x1xi32> to vector<128x1xf32>
      %95 = vector.shape_cast %94 : vector<128x1xf32> to vector<1x128x1xf32>
      %cst_31 = arith.constant dense<0.000000e+00> : vector<1xf32>
      %96 = vector.multi_reduction <add>, %95, %cst_31 [1, 2] : vector<1x128x1xf32> to vector<1xf32>
      %97 = vector.shape_cast %96 : vector<1xf32> to vector<1x1x1xf32>
      %98 = vector.extract %97[0, 0, 0] : f32 from vector<1x1x1xf32>
      %cst_32 = arith.constant 1.000000e+02 : f32
      %99 = arith.mulf %cst_32, %98 : f32
      %cst_33 = arith.constant 1.280000e+02 : f32
      %100 = arith.divf %99, %cst_33 : f32
      %c0_34 = arith.constant 0 : index
      %101 = memref.load %arg6[%c0_34] : memref<1xf32, #tpu.memory_space<smem>>
      memref.store %100, %arg6[%c0_34] : memref<1xf32, #tpu.memory_space<smem>>
      %c0_35 = arith.constant 0 : index
      %102 = memref.load %arg9[%c0_35] : memref<1xf32, #tpu.memory_space<smem>>
      %cst_36 = arith.constant 2.048000e+03 : f32
      %103 = arith.divf %102, %cst_36 : f32
      %c0_37 = arith.constant 0 : index
      %104 = memref.load %arg7[%c0_37] : memref<1xf32, #tpu.memory_space<smem>>
      memref.store %103, %arg7[%c0_37] : memref<1xf32, #tpu.memory_space<smem>>
    } else {
    }
    return
  }
  func.func @transform_0(%arg0: i32, %arg1: i32) -> (i32, i32, i32) {
    %c0_i32 = arith.constant 0 : i32
    %c0_i32_0 = arith.constant 0 : i32
    return %arg0, %c0_i32, %arg1 : i32, i32, i32
  }
  func.func @transform_1(%arg0: i32, %arg1: i32) -> (i32, i32) {
    %c0_i32 = arith.constant 0 : i32
    %c0_i32_0 = arith.constant 0 : i32
    %c0_i32_1 = arith.constant 0 : i32
    return %c0_i32, %c0_i32_0 : i32, i32
  }
  func.func @transform_2(%arg0: i32, %arg1: i32) -> (i32, i32, i32) {
    %c0_i32 = arith.constant 0 : i32
    %c0_i32_0 = arith.constant 0 : i32
    return %arg0, %c0_i32, %arg1 : i32, i32, i32
  }
  func.func @transform_3(%arg0: i32, %arg1: i32) -> (i32, i32, i32) {
    %c0_i32 = arith.constant 0 : i32
    %c0_i32_0 = arith.constant 0 : i32
    return %arg0, %c0_i32, %arg1 : i32, i32, i32
  }
  func.func @transform_4(%arg0: i32, %arg1: i32) -> i32 {
    %c0_i32 = arith.constant 0 : i32
    %c0_i32_0 = arith.constant 0 : i32
    return %c0_i32 : i32
  }
  func.func @transform_5(%arg0: i32, %arg1: i32) -> i32 {
    %c0_i32 = arith.constant 0 : i32
    %c0_i32_0 = arith.constant 0 : i32
    return %c0_i32 : i32
  }
}

</mosaic_0001>

<bundles_post_ra>
// kernel: tpu_custom_call.1
= control target key start
LH: loop header
LB: loop body
LE: loop exit
PB: predicated region body
PF: predicated region fallthrough
CT: control target
= control target key end

     0   :  { %s2904_s0 = inlined_call_operand.vmem [shape: f32[2,4,256], index: 0, kind: input, shape index: {}]   ;;  %s2905_s1 = inlined_call_operand.vmem [shape: f32[128,4], index: 1, kind: input, shape index: {}]   ;;  %s2906_s2 = inlined_call_operand.hbm [shape: f32[2,4,256], index: 2, kind: output, shape index: {0}]   ;;  %s2907_s3 = inlined_call_operand.hbm [shape: s32[2,1,256], index: 3, kind: output, shape index: {1}]   ;;  %s2908_s4 = inlined_call_operand.hbm [shape: f32[1], index: 4, kind: output, shape index: {2}]   ;;  %s2909_s5 = inlined_call_operand.hbm [shape: f32[1], index: 5, kind: output, shape index: {3}]  }
   0x1   :  { %2917 = sst [smem:[#allocation18_spill]] %s2904_s0 }
   0x2   :  { %11 = vsyncpa [#allocation5], 0 }
   0x3   :  { %13 = vsyncpa [#allocation5 + $0x1], 0 }
   0x4   :  { %14 = vsyncpa [#allocation8], 0 }
   0x5   :  { %16 = vsyncpa [#allocation8 + $0x1], 0 }
   0x6   :  { %17 = vsyncpa [#allocation6], 0 }
   0x7   :  { %18 = vsyncpa [#allocation11], 0  ;;  %s1939_s18 = smov 0   ;;  %s1941_s19 = smov 0  }
   0x8   :  { %s1943_s20 = smov 0   ;;  %s1945_s21 = smov 0  }
   0x9   :  { %s1947_s22 = smov 0   ;;  %s1949_s23 = smov 0  }
   0xa   :  { %s1951_s24 = smov 0   ;;  %s1953_s25 = smov 0  }
   0xb LB: > { %s1470_s26 = sadd.s32 4294967295, %s1892_s25   ;;  %s1471_s27 = sadd.s32 4294967294, %s1892_s25   ;;  %s1892_s25 = sphi %s1953_s25, %s24_s25   ;;  %s1888_s24 = sphi %s1951_s24, %s2939_s24   ;;  %s1884_s23 = sphi %s1949_s23, %s2938_s23   ;;  %s1880_s22 = sphi %s1947_s22, %s2937_s22   ;;  %s1876_s21 = sphi %s1945_s21, %s2936_s21   ;;  %s1872_s20 = sphi %s1943_s20, %s2935_s20   ;;  %s1868_s19 = sphi %s1941_s19, %s2934_s19   ;;  %s1864_s18 = sphi %s1939_s18, %s2933_s18  }
   0xc   : > { %s33_s28 = sadd.s32 1, %s1884_s23  ;;  %s36_s29 = sadd.s32 1, %s1888_s24 }
   0xd   : > { %p34_p0 = scmp.ge.s32.totalorder %s33_s28, 2  ;;  %p104_p1 = scmp.ne.s32.totalorder %s1872_s20, %s1868_s19 }
   0xe   : > { %p1985_p2 = scmp.eq.s32.totalorder %s1470_s26, 3  ;;  %p110_p5 = scmp.ne.s32.totalorder %s1868_s19, %s1864_s18 }
   0xf   : > { %s2941_s28 = smov (%p34_p0, %s33_s28), 0  ;;  %s2943_s29 = smov (!%p34_p0, %s36_s29), %s1888_s24 }
  0x10   : > { %2919 = sst [smem:[#allocation16_spill]] %s2941_s28  ;;  %s90_s6 = ssub.s32 %s1884_s23, %s2941_s28 }
  0x11   : > { %p1996_p3 = por %p1985_p2, %p104_p1  ;;  %p38_p4 = scmp.ge.s32.totalorder %s2943_s29, 2 }
  0x12   : > { %p111_p6 = scmp.eq.s32.totalorder %s1471_s27, 3  ;;  %p1474_p7 = scmp.ge.s32.totalorder %s1892_s25, 1 }
  0x13   : > { %s2945_s29 = smov (%p38_p4, %s2943_s29), 0  ;;  %p213_p9 = scmp.lt.s32.totalorder %s1892_s25, 5 }
  0x14   : > { %2921 = sst [smem:[#allocation17_spill]] %s2945_s29  ;;  %p2005_p8 = por %p111_p6, %p110_p5 }
  0x15   : > { %s89_s9 = ssub.s32 %s1888_s24, %s2945_s29  ;;  %s94_s10 = sadd.s32 1, %s1872_s20 }
  0x16   : > { %s2922_s8 = scalar_select %p2005_p8, 1, 0 }
  0x17   : > { %s91_s11 = sor.u32 %s90_s6, %s89_s9  ;;  %p214_p10 = pnand %p1474_p7, %p213_p9 }
  0x18   : > { %p92_p11 = scmp.eq.s32.totalorder %s91_s11, 0  ;;  %s2017_s13 = sand.u32 (!%p214_p10), 1, %s1868_s19  }
  0x19   : > { %217 = sbr.rel (%p214_p10) target bundleno = 1140 (0x474), region = 28  ;;  %p248_p12 = scmp.lt.s32.totalorder (!%p214_p10), %s1880_s22, 1 }
  0x1a   : > { %s2014_s12 = scalar_select %p92_p11, %s1872_s20, %s94_s10  }
  0x1b   : > { %s1475_s14 = sshll.u32 (!%p214_p10), %s2017_s13, 2  ;;  %p250_p13 = scmp.lt.s32.totalorder (!%p214_p10), %s1876_s21, 1 }
  0x1c   : > { %p256_p0 = scmp.eq.s32.totalorder (!%p214_p10), %s1880_s22, 0  ;;  %p257_p1 = scmp.eq.s32.totalorder (!%p214_p10), %s1876_s21, 0 }
  0x1d   : > { %p260_p4 = scmp.eq.s32.totalorder (!%p214_p10), %s1880_s22, 1  ;;  %s2923_s0 = sld [smem:[#allocation18_spill]] (!%p214_p10) }
  0x1e   : > { %p258_p5 = pnand (!%p214_p10), %p257_p1, %p256_p0  ;;  %p261_p6 = scmp.eq.s32.totalorder (!%p214_p10), %s1876_s21, 1 }
  0x1f   : > { %s2037_s29 = scalar_lea.vmem (!%p214_p10), [#allocation4], %s1475_s14  ;;  %s2916_s28 = scalar_lea.vmem (!%p214_p10), [#allocation7], %s2017_s13 }
  0x20   : > { %s249_s15 = scalar_select %p248_p12, %s1880_s22, 1 }
  0x21   : > { %s251_s16 = scalar_select %p250_p13, %s1876_s21, 1 }
  0x22   : > { %s1476_s17 = sshll.u32 %s249_s15, 1  ;;  %p2033_p7 = pnand %p261_p6, %p260_p4  ;;  %vm266_vm0 = vcmask (!%p258_p5), 7168   ;;  %v1894_v0 = vmov (!%p258_p5), 0.0  }
  0x23   : > { %s253_s26 = sadd.s32 %s1476_s17, %s251_s16  ;;  %265 = sbr.rel (%p258_p5) target bundleno = 43 (0x2b), region = 32  ;;  %267 = vst.msk [vmem:[#allocation2] sm:$0xff] (!%p258_p5), %vm266_vm0, %v1894_v0  ;;  %268 = vst.msk [vmem:[#allocation2 + $0x8] sm:$0xff] (!%p258_p5), %vm266_vm0, %v1894_v0 }
  0x24   : > { %s1477_s27 = sshll.u32 %s253_s26, 2  ;;  %269 = vst.msk [vmem:[#allocation2 + $0x10] sm:$0xff] (!%p258_p5), %vm266_vm0, %v1894_v0  ;;  %270 = vst.msk [vmem:[#allocation2 + $0x18] sm:$0xff] (!%p258_p5), %vm266_vm0, %v1894_v0  ;;  %s1895_s14 = smov (!%p258_p5), 0.0  }
  0x25   : > { %s2030_s10 = scalar_lea.vmem %s2923_s0, %s1477_s27  ;;  %271 = vst.msk [vmem:[#allocation2 + $0x20] sm:$0xff] (!%p258_p5), %vm266_vm0, %v1894_v0  ;;  %272 = vst.msk [vmem:[#allocation2 + $0x28] sm:$0xff] (!%p258_p5), %vm266_vm0, %v1894_v0  ;;  %284 = sst [smem:[#allocation3]] (!%p258_p5), %s1895_s14 }
  0x26   : > { %273 = vst.msk [vmem:[#allocation2 + $0x30] sm:$0xff] (!%p258_p5), %vm266_vm0, %v1894_v0  ;;  %274 = vst.msk [vmem:[#allocation2 + $0x38] sm:$0xff] (!%p258_p5), %vm266_vm0, %v1894_v0 }
  0x27   : > { %275 = vst.msk [vmem:[#allocation2 + $0x40] sm:$0xff] (!%p258_p5), %vm266_vm0, %v1894_v0  ;;  %276 = vst.msk [vmem:[#allocation2 + $0x48] sm:$0xff] (!%p258_p5), %vm266_vm0, %v1894_v0 }
  0x28   : > { %277 = vst.msk [vmem:[#allocation2 + $0x50] sm:$0xff] (!%p258_p5), %vm266_vm0, %v1894_v0  ;;  %278 = vst.msk [vmem:[#allocation2 + $0x58] sm:$0xff] (!%p258_p5), %vm266_vm0, %v1894_v0 }
  0x29   : > { %279 = vst.msk [vmem:[#allocation2 + $0x60] sm:$0xff] (!%p258_p5), %vm266_vm0, %v1894_v0  ;;  %280 = vst.msk [vmem:[#allocation2 + $0x68] sm:$0xff] (!%p258_p5), %vm266_vm0, %v1894_v0 }
  0x2a   : > { %281 = vst.msk [vmem:[#allocation2 + $0x70] sm:$0xff] %vm266_vm0, %v1894_v0  ;;  %282 = vst.msk [vmem:[#allocation2 + $0x78] sm:$0xff] %vm266_vm0, %v1894_v0 }
  0x2b PF: > { %v2059_v1 = vld [vmem:[%s2905_s1 + $0x10] sm:$0xff]  ;;  %v2064_v2 = vld [vmem:[%s2905_s1] sm:$0xff]  ;;  %v1896_v3 = vmov 0   ;;  %v2071_v4 = vld [vmem:[%s2905_s1 + $0x18] sm:$0xff]  ;;  %v1897_v11 = vmov 1   ;;  %v1898_v18 = vmov 2   ;;  %v382_v21 = vlaneseq }
  0x2c   : > { %1720 = vset.pattern.permute.xlu1 %v1896_v3  ;;  %1719 = vset.pattern.permute.xlu0 %v1896_v3  ;;  %v2076_v5 = vld [vmem:[%s2905_s1 + $0x8] sm:$0xff]  ;;  %v2088_v7 = vld [vmem:[%s2905_s1 + $0x20] sm:$0xff]  ;;  %v2095_v8 = vld [vmem:[%s2905_s1 + $0x38] sm:$0xff]  ;;  %v1899_v20 = vmov 3   ;;  %vm1901_vm1 = vmmov 0   ;;  %s1149_s15 = sld [smem:[#allocation3]] }
  0x2d   : > { %314 = vperm.xlu1 %1720, %v2059_v1   ;;  %304 = vperm.xlu0 %1719, %v2064_v2   ;;  %v2083_v6 = vld [vmem:[%s2905_s1 + $0x28] sm:$0xff]  ;;  %v2100_v9 = vld [vmem:[%s2905_s1 + $0x30] sm:$0xff]  ;;  %v2114_v12 = vld [vmem:[%s2905_s1 + $0x60] sm:$0xff]  ;;  %v2197_v24 = vshrl.u32 %v382_v21, 7 }
  0x2e   : > { %v2107_v10 = vld [vmem:[%s2905_s1 + $0x48] sm:$0xff]  ;;  %v2121_v13 = vld [vmem:[%s2905_s1 + $0x78] sm:$0xff]  ;;  %v2130_v14 = vld [vmem:[%s2905_s1 + $0x40] sm:$0xff] }
  0x2f   : > { %v2137_v15 = vld [vmem:[%s2905_s1 + $0x50] sm:$0xff]  ;;  %v2144_v16 = vld [vmem:[%s2905_s1 + $0x58] sm:$0xff]  ;;  %v2154_v17 = vld [vmem:[%s2905_s1 + $0x68] sm:$0xff]  ;;  %v384_v27 = vsub.s32 0, %v2197_v24  ;;  %v500_v31 = vsub.s32 1, %v2197_v24 }
  0x30   : > { %v2173_v19 = vld [vmem:[%s2905_s1 + $0x70] sm:$0xff]  ;;  %v2206_v30 = vld [vmem:[%s2030_s10] sm:$0xf]  ;;  %s1510_s10 = sshll.u32 %s1876_s21, 7 }
  0x31   : > { %319 = vperm.xlu1 %1720, %v2071_v4   ;;  %309 = vperm.xlu0 %1719, %v2076_v5   ;;  %v2212_v32 = vrot.slane %v2206_v30, %v384_v27  ;;  %v2218_v36 = vrot.slane %v2206_v30, %v500_v31 }
  0x35   : > { %329 = vperm.xlu1 %1720, %v2083_v6   ;;  %324 = vperm.xlu0 %1719, %v2088_v7  }
  0x39   : > { %339 = vperm.xlu1 %1720, %v2095_v8   ;;  %334 = vperm.xlu0 %1719, %v2100_v9  }
  0x3d   : > { %1721 = vset.pattern.permute.xlu1 %v1897_v11  ;;  %349 = vperm.xlu0 %1719, %v2107_v10  }
  0x3e   : > { %439 = vperm.xlu1 %1721, %v2076_v5  }
  0x41   : > { %364 = vperm.xlu0 %1719, %v2114_v12  }
  0x42   : > { %443 = vperm.xlu1 %1721, %v2059_v1  }
  0x45   : > { %379 = vperm.xlu0 %1719, %v2121_v13  }
  0x46   : > { %451 = vperm.xlu1 %1721, %v2088_v7  }
  0x49   : > { %1726 = vset.pattern.permute.xlu0 %v1897_v11 }
  0x4a   : > { %459 = vperm.xlu1 %1721, %v2100_v9   ;;  %435 = vperm.xlu0 %1726, %v2064_v2  }
  0x4e   : > { %1722 = vset.pattern.permute.xlu1 %v1896_v3  ;;  %447 = vperm.xlu0 %1726, %v2071_v4  }
  0x4f   : > { %344 = vperm.xlu1 %1722, %v2130_v14  }
  0x52   : > { %455 = vperm.xlu0 %1726, %v2083_v6  }
  0x53   : > { %354 = vperm.xlu1 %1722, %v2137_v15  }
  0x56   : > { %463 = vperm.xlu0 %1726, %v2095_v8  }
  0x57   : > { %359 = vperm.xlu1 %1722, %v2144_v16  }
  0x5a   : > { %467 = vperm.xlu0 %1726, %v2130_v14  }
  0x5b   : > { %1723 = vset.pattern.permute.xlu1 %v1897_v11 }
  0x5c   : > { %471 = vperm.xlu1 %1723, %v2107_v10  }
  0x5e   : > { %479 = vperm.xlu0 %1726, %v2144_v16  }
  0x60   : > { %475 = vperm.xlu1 %1723, %v2137_v15  }
  0x62   : > { %487 = vperm.xlu0 %1726, %v2154_v17  }
  0x64   : > { %1724 = vset.pattern.permute.xlu1 %v1898_v18 }
  0x65   : > { %551 = vperm.xlu1 %1724, %v2064_v2  }
  0x66   : > { %1728 = vset.pattern.permute.xlu0 %v1898_v18 }
  0x67   : > { %555 = vperm.xlu0 %1728, %v2076_v5  }
  0x69   : > { %559 = vperm.xlu1 %1724, %v2059_v1  }
  0x6b   : > { %567 = vperm.xlu0 %1728, %v2088_v7  }
  0x6d   : > { %563 = vperm.xlu1 %1724, %v2071_v4  }
  0x6f   : > { %575 = vperm.xlu0 %1728, %v2100_v9  }
  0x71   : > { %571 = vperm.xlu1 %1724, %v2083_v6  }
  0x73   : > { %583 = vperm.xlu0 %1728, %v2130_v14  }
  0x75   : > { %579 = vperm.xlu1 %1724, %v2095_v8  }
  0x77   : > { %595 = vperm.xlu0 %1728, %v2144_v16  }
  0x79   : > { %1725 = vset.pattern.permute.xlu1 %v1896_v3 }
  0x7a   : > { %369 = vperm.xlu1 %1725, %v2154_v17  }
  0x7b   : > { %599 = vperm.xlu0 %1728, %v2114_v12  }
  0x7e   : > { %374 = vperm.xlu1 %1725, %v2173_v19  }
  0x7f   : > { %611 = vperm.xlu0 %1728, %v2121_v13  }
  0x82   : > { %1727 = vset.pattern.permute.xlu1 %v1897_v11 }
  0x83   : > { %483 = vperm.xlu1 %1727, %v2114_v12   ;;  %1732 = vset.pattern.permute.xlu0 %v1899_v20 }
  0x84   : > { %671 = vperm.xlu0 %1732, %v2076_v5  }
  0x87   : > { %491 = vperm.xlu1 %1727, %v2173_v19  }
  0x88   : > { %683 = vperm.xlu0 %1732, %v2088_v7  }
  0x8b   : > { %495 = vperm.xlu1 %1727, %v2121_v13  }
  0x8c   : > { %691 = vperm.xlu0 %1732, %v2100_v9  }
  0x8f   : > { %1729 = vset.pattern.permute.xlu1 %v1898_v18 }
  0x90   : > { %587 = vperm.xlu1 %1729, %v2107_v10   ;;  %703 = vperm.xlu0 %1732, %v2107_v10  }
  0x94   : > { %591 = vperm.xlu1 %1729, %v2137_v15   ;;  %715 = vperm.xlu0 %1732, %v2114_v12  }
  0x98   : > { %1730 = vset.pattern.permute.xlu1 %v1899_v20  ;;  %723 = vperm.xlu0 %1732, %v2173_v19  }
  0x99   : > { %667 = vperm.xlu1 %1730, %v2064_v2  }
  0x9d   : > { %675 = vperm.xlu1 %1730, %v2059_v1  }
  0xa1   : > { %679 = vperm.xlu1 %1730, %v2071_v4  }
  0xa5   : > { %687 = vperm.xlu1 %1730, %v2083_v6  }
  0xa9   : > { %695 = vperm.xlu1 %1730, %v2095_v8  }
  0xac   : > { %v2193_v22 = vpop.permute.xlu1 %314  ;;  %v305_v23 = vpop.permute.xlu0 %304 }
  0xad   : > { %1731 = vset.pattern.permute.xlu1 %v1898_v18  ;;  %v386_v47 = vsub.f32 %v305_v23, %v2212_v32 }
  0xae   : > { %603 = vperm.xlu1 %1731, %v2154_v17  }
  0xaf   : > { %v402_v53 = vmul.f32 %v386_v47, %v386_v47 }
  0xb0   : > { %v2199_v25 = vpop.permute.xlu1 %319  ;;  %v310_v26 = vpop.permute.xlu0 %309 }
  0xb1   : > { %v387_v35 = vsub.f32 %v310_v26, %v2212_v32 }
  0xb2   : > { %607 = vperm.xlu1 %1731, %v2173_v19  }
  0xb3   : > { %v403_v39 = vmul.f32 %v387_v35, %v387_v35 }
  0xb4   : > { %v2203_v28 = vpop.permute.xlu1 %329  ;;  %v325_v29 = vpop.permute.xlu0 %324 }
  0xb5   : > { %v390_v44 = vsub.f32 %v325_v29, %v2212_v32 }
  0xb6   : > { %1733 = vset.pattern.permute.xlu1 %v1899_v20  ;;  %940 = vxpose.xlu0.b32.start [1/16] (narrow) %v2064_v2, 8 }
  0xb7   : > { %699 = vperm.xlu1 %1733, %v2130_v14   ;;  %v406_v49 = vmul.f32 %v390_v44, %v390_v44 }
  0xb8   : > { %v2214_v33 = vpop.permute.xlu1 %339  ;;  %v335_v34 = vpop.permute.xlu0 %334 }
  0xb9   : > { %v392_v50 = vsub.f32 %v335_v34, %v2212_v32 }
  0xba   : > { %941 = vxpose.xlu0.b32.cont [2/16] (narrow) %v2076_v5, 8 }
  0xbb   : > { %707 = vperm.xlu1 %1733, %v2137_v15   ;;  %v408_v56 = vmul.f32 %v392_v50, %v392_v50 }
  0xbc   : > { %v350_v37 = vpop.permute.xlu0 %349 }
  0xbd   : > { %v440_v38 = vpop.permute.xlu1 %439 }
  0xbe   : > { %v503_v40 = vsub.f32 %v440_v38, %v2218_v36  ;;  %942 = vxpose.xlu0.b32.cont [3/16] (narrow) %v2059_v1, 8 }
  0xbf   : > { %711 = vperm.xlu1 %1733, %v2144_v16  }
  0xc0   : > { %v519_v41 = vmul.f32 %v503_v40, %v503_v40  ;;  %v2225_v42 = vpop.permute.xlu0 %364 }
  0xc1   : > { %v444_v43 = vpop.permute.xlu1 %443 }
  0xc2   : > { %v2228_v45 = vadd.f32 %v519_v41, %v403_v39  ;;  %943 = vxpose.xlu0.b32.cont [4/16] (narrow) %v2071_v4, 8 }
  0xc3   : > { %719 = vperm.xlu1 %1733, %v2154_v17  }
  0xc4   : > { %v2232_v46 = vpop.permute.xlu0 %379 }
  0xc5   : > { %v452_v48 = vpop.permute.xlu1 %451 }
  0xc6   : > { %v506_v51 = vsub.f32 %v452_v48, %v2218_v36  ;;  %944 = vxpose.xlu0.b32.cont [5/16] (narrow) %v2088_v7, 8 }
  0xc7   : > { %727 = vperm.xlu1 %1733, %v2121_v13  }
  0xc8   : > { %v522_v52 = vmul.f32 %v506_v51, %v506_v51 }
  0xc9   : > { %v460_v54 = vpop.permute.xlu1 %459  ;;  %v436_v55 = vpop.permute.xlu0 %435 }
  0xca   : > { %v2239_v57 = vadd.f32 %v522_v52, %v406_v49  ;;  %v508_v58 = vsub.f32 %v460_v54, %v2218_v36  ;;  %v502_v59 = vsub.f32 %v436_v55, %v2218_v36  ;;  %945 = vxpose.xlu0.b32.cont [6/16] (narrow) %v2083_v6, 8  ;;  %v395_v6 = vsub.f32 %v350_v37, %v2212_v32 }
  0xcb   : > { %v504_v37 = vsub.f32 %v444_v43, %v2218_v36  ;;  %v389_v43 = vsub.f32 %v2199_v25, %v2212_v32  ;;  %v1900_v55 = vmov 0.0|0.0  }
  0xcc   : > { %v524_v60 = vmul.f32 %v508_v58, %v508_v58  ;;  %v518_v61 = vmul.f32 %v502_v59, %v502_v59  ;;  %v411_v18 = vmul.f32 %v395_v6, %v395_v6  ;;  %1590 = vmatprep.subr.bf16.mxu0 %v1900_v55 }
  0xcd   : > { %v448_v62 = vpop.permute.xlu0 %447  ;;  %v520_v44 = vmul.f32 %v504_v37, %v504_v37 }
  0xce   : > { %v2244_v63 = vadd.f32 %v524_v60, %v408_v56  ;;  %v534_v0 = vadd.f32 %v518_v61, %v402_v53  ;;  %v2246_v1 = vpop.permute.xlu1 %344  ;;  %946 = vxpose.xlu0.b32.cont [7/16] (narrow) %v2100_v9, 8  ;;  %v505_v47 = vsub.f32 %v448_v62, %v2218_v36  ;;  %v405_v56 = vmul.f32 %v389_v43, %v389_v43 }
  0xd0   : > { %v521_v53 = vmul.f32 %v505_v47, %v505_v47 }
  0xd1   : > { %v2249_v2 = vpop.permute.xlu0 %455 }
  0xd2   : > { %v355_v3 = vpop.permute.xlu1 %354  ;;  %947 = vxpose.xlu0.b32.cont [8/16] (narrow) %v2095_v8, 8  ;;  %v616_v8 = vsub.s32 2, %v2197_v24  ;;  %v537_v25 = vadd.f32 %v521_v53, %v405_v56  ;;  %v391_v53 = vsub.f32 %v2203_v28, %v2212_v32 }
  0xd3   : > { %v396_v23 = vsub.f32 %v355_v3, %v2212_v32 }
  0xd5   : > { %v2252_v4 = vpop.permute.xlu0 %463  ;;  %v412_v34 = vmul.f32 %v396_v23, %v396_v23 }
  0xd6   : > { %v2254_v5 = vpop.permute.xlu1 %359  ;;  %948 = vxpose.xlu0.b32.cont [9/16] (narrow) %v2130_v14, 8 }
  0xd9   : > { %v2258_v7 = vpop.permute.xlu0 %467 }
  0xda   : > { %949 = vxpose.xlu0.b32.cont [10/16] (narrow) %v2107_v10, 8  ;;  %v2273_v10 = vrot.slane %v2206_v30, %v616_v8 }
  0xdb   : > { %v472_v11 = vpop.permute.xlu1 %471 }
  0xdc   : > { %v511_v9 = vsub.f32 %v472_v11, %v2218_v36 }
  0xdd   : > { %v2262_v20 = vpop.permute.xlu0 %479 }
  0xde   : > { %v527_v26 = vmul.f32 %v511_v9, %v511_v9  ;;  %950 = vxpose.xlu0.b32.cont [11/16] (narrow) %v2137_v15, 8  ;;  %v388_v15 = vsub.f32 %v2193_v22, %v2212_v32 }
  0xdf   : > { %v476_v14 = vpop.permute.xlu1 %475 }
  0xe0   : > { %v2267_v27 = vadd.f32 %v527_v26, %v411_v18  ;;  %v512_v29 = vsub.f32 %v476_v14, %v2218_v36 }
  0xe1   : > { %v2270_v31 = vpop.permute.xlu0 %487 }
  0xe2   : > { %v528_v35 = vmul.f32 %v512_v29, %v512_v29  ;;  %951 = vxpose.xlu0.b32.cont [12/16] (narrow) %v2144_v16, 8  ;;  %v404_v16 = vmul.f32 %v388_v15, %v388_v15 }
  0xe4   : > { %v2277_v38 = vadd.f32 %v528_v35, %v412_v34  ;;  %v552_v39 = vpop.permute.xlu1 %551  ;;  %v536_v22 = vadd.f32 %v520_v44, %v404_v16 }
  0xe5   : > { %v618_v40 = vsub.f32 %v552_v39, %v2273_v10 }
  0xe6   : > { %v2282_v41 = vpop.permute.xlu0 %555  ;;  %952 = vxpose.xlu0.b32.cont [13/16] (narrow) %v2114_v12, 8 }
  0xe7   : > { %v634_v48 = vmul.f32 %v618_v40, %v618_v40 }
  0xe8   : > { %v560_v49 = vpop.permute.xlu1 %559 }
  0xe9   : > { %v650_v50 = vadd.f32 %v634_v48, %v534_v0  ;;  %v620_v51 = vsub.f32 %v560_v49, %v2273_v10 }
  0xea   : > { %v568_v52 = vpop.permute.xlu0 %567  ;;  %953 = vxpose.xlu0.b32.cont [14/16] (narrow) %v2154_v17, 8 }
  0xeb   : > { %v636_v54 = vmul.f32 %v620_v51, %v620_v51  ;;  %v622_v35 = vsub.f32 %v568_v52, %v2273_v10 }
  0xec   : > { %v564_v12 = vpop.permute.xlu1 %563 }
  0xed   : > { %v652_v58 = vadd.f32 %v636_v54, %v536_v22  ;;  %v621_v59 = vsub.f32 %v564_v12, %v2273_v10  ;;  %v638_v44 = vmul.f32 %v622_v35, %v622_v35  ;;  %v507_v54 = vsub.f32 %v2249_v2, %v2218_v36 }
  0xee   : > { %v576_v60 = vpop.permute.xlu0 %575  ;;  %954 = vxpose.xlu0.b32.cont [15/16] (narrow) %v2173_v19, 8  ;;  %v1902_v35 = vmov 0.0  }
  0xef   : > { %v637_v61 = vmul.f32 %v621_v59, %v621_v59  ;;  %v624_v47 = vsub.f32 %v576_v60, %v2273_v10  ;;  %v654_v51 = vadd.f32 %v638_v44, %v2239_v57  ;;  %1587 = vmatprep.mubr.msk.f32.mxu0 %vm1901_vm1, %v1902_v35  ;;  %v393_v44 = vsub.f32 %v2214_v33, %v2212_v32 }
  0xf0   : > { %v572_v62 = vpop.permute.xlu1 %571 }
  0xf1   : > { %v2293_v0 = vadd.f32 %v637_v61, %v537_v25  ;;  %v640_v52 = vmul.f32 %v624_v47, %v624_v47  ;;  %v619_v61 = vsub.f32 %v2282_v41, %v2273_v10  ;;  %v623_v57 = vsub.f32 %v572_v62, %v2273_v10 }
  0xf2   : > { %v2295_v17 = vpop.permute.xlu0 %583  ;;  %955 = vxpose.xlu0.b32.end [16/16] (narrow) %v2121_v13, 8  ;;  %v732_v13 = vsub.s32 3, %v2197_v24  ;;  %v409_v33 = vmul.f32 %v393_v44, %v393_v44 }
  0xf3   : > { %v635_v47 = vmul.f32 %v619_v61, %v619_v61 }
  0xf4   : > { %v580_v3 = vpop.permute.xlu1 %579  ;;  %v2317_v37 = vrot.slane %v2206_v30, %v732_v13  ;;  %v656_v13 = vadd.f32 %v640_v52, %v2244_v63 }
  0xf6   : > { %v2298_v6 = vpop.permute.xlu0 %595 }
  0xf9   : > { %v2300_v11 = vpop.permute.xlu1 %369 }
  0xfa   : > { %v2304_v9 = vpop.permute.xlu0 %599 }
  0xfd   : > { %v2302_v18 = vpop.permute.xlu1 %374 }
  0xfe   : > { %v2308_v19 = vpop.permute.xlu0 %611 }
 0x102   : > { %v2306_v8 = vpop.permute.xlu1 %483 }
 0x103   : > { %v672_v26 = vpop.permute.xlu0 %671 }
 0x104   : > { %v735_v41 = vsub.f32 %v672_v26, %v2317_v37 }
 0x106   : > { %v2310_v23 = vpop.permute.xlu1 %491 }
 0x107   : > { %v684_v34 = vpop.permute.xlu0 %683 }
 0x108   : > { %v738_v15 = vsub.f32 %v684_v34, %v2317_v37 }
 0x10a   : > { %v2312_v14 = vpop.permute.xlu1 %495  ;;  %v754_v49 = vmul.f32 %v738_v15, %v738_v15  ;;  %v509_v15 = vsub.f32 %v2252_v4, %v2218_v36 }
 0x10b   : > { %v692_v40 = vpop.permute.xlu0 %691 }
 0x10c   : > { %v740_v16 = vsub.f32 %v692_v40, %v2317_v37  ;;  %v2330_v56 = vadd.f32 %v754_v49, %v654_v51  ;;  %v525_v52 = vmul.f32 %v509_v15, %v509_v15 }
 0x10e   : > { %v756_v59 = vmul.f32 %v740_v16, %v740_v16  ;;  %v625_v16 = vsub.f32 %v580_v3, %v2273_v10 }
 0x10f   : > { %v588_v29 = vpop.permute.xlu1 %587  ;;  %v704_v49 = vpop.permute.xlu0 %703 }
 0x110   : > { %v627_v28 = vsub.f32 %v588_v29, %v2273_v10  ;;  %v2346_v62 = vadd.f32 %v756_v59, %v656_v13  ;;  %v407_v29 = vmul.f32 %v391_v53, %v391_v53  ;;  %v743_v51 = vsub.f32 %v704_v49, %v2317_v37 }
 0x111   : > { %v541_v13 = vadd.f32 %v525_v52, %v409_v33  ;;  %v626_v52 = vsub.f32 %v2295_v17, %v2273_v10 }
 0x112   : > { %v759_v61 = vmul.f32 %v743_v51, %v743_v51 }
 0x113   : > { %v2319_v39 = vpop.permute.xlu1 %591 }
 0x118   : > { %v668_v48 = vpop.permute.xlu1 %667 }
 0x119   : > { %v734_v43 = vsub.f32 %v668_v48, %v2317_v37  ;;  %v639_v48 = vmul.f32 %v623_v57, %v623_v57 }
 0x11b   : > { %v750_v22 = vmul.f32 %v734_v43, %v734_v43  ;;  %v643_v43 = vmul.f32 %v627_v28, %v627_v28 }
 0x11c   : > { %v676_v12 = vpop.permute.xlu1 %675 }
 0x11d   : > { %v2332_v60 = vadd.f32 %v750_v22, %v650_v50  ;;  %v736_v25 = vsub.f32 %v676_v12, %v2317_v37  ;;  %v523_v50 = vmul.f32 %v507_v54, %v507_v54  ;;  %v651_v12 = vadd.f32 %v635_v47, %v2228_v45 }
 0x11e   : > { %v659_v3 = vadd.f32 %v643_v43, %v2267_v27  ;;  %v510_v43 = vsub.f32 %v2258_v7, %v2218_v36  ;;  %v516_v7 = vsub.f32 %v2310_v23, %v2218_v36  ;;  %v513_v23 = vsub.f32 %v2262_v20, %v2218_v36 }
 0x11f   : > { %v782_v2 = vmin.f32 %v2332_v60, %v2330_v56  ;;  %v752_v34 = vmul.f32 %v736_v25, %v736_v25  ;;  %v539_v26 = vadd.f32 %v523_v50, %v407_v29  ;;  %v641_v25 = vmul.f32 %v625_v16, %v625_v16 }
 0x120   : > { %v680_v40 = vpop.permute.xlu1 %679  ;;  %v2365_v29 = vadd.f32 %v759_v61, %v659_v3  ;;  %v514_v16 = vsub.f32 %v2306_v8, %v2218_v36  ;;  %v630_v8 = vsub.f32 %v2304_v9, %v2273_v10  ;;  %v629_v61 = vsub.f32 %v2298_v6, %v2273_v10 }
 0x121   : > { %v2348_v63 = vadd.f32 %v752_v34, %v652_v58  ;;  %v751_v58 = vmul.f32 %v735_v41, %v735_v41  ;;  %v737_v53 = vsub.f32 %v680_v40, %v2317_v37  ;;  %v655_v59 = vadd.f32 %v639_v48, %v539_v26 }
 0x122   : > { %v657_v41 = vadd.f32 %v641_v25, %v541_v13  ;;  %v398_v26 = vsub.f32 %v2225_v42, %v2212_v32  ;;  %v397_v42 = vsub.f32 %v2254_v5, %v2212_v32  ;;  %v400_v25 = vsub.f32 %v2302_v18, %v2212_v32 }
 0x123   : > { %v784_v4 = vmin.f32 %v2348_v63, %v2346_v62  ;;  %v2360_v34 = vadd.f32 %v751_v58, %v651_v12  ;;  %v753_v50 = vmul.f32 %v737_v53, %v737_v53  ;;  %v530_v53 = vmul.f32 %v514_v16, %v514_v16 }
 0x124   : > { %v688_v22 = vpop.permute.xlu1 %687  ;;  %v414_v33 = vmul.f32 %v398_v26, %v398_v26  ;;  %v646_v5 = vmul.f32 %v630_v8, %v630_v8  ;;  %v416_v16 = vmul.f32 %v400_v25, %v400_v25  ;;  %v529_v20 = vmul.f32 %v513_v23, %v513_v23 }
 0x125   : > { %v739_v54 = vsub.f32 %v688_v22, %v2317_v37  ;;  %v2370_v27 = vadd.f32 %v753_v50, %v2293_v0  ;;  %v394_v0 = vsub.f32 %v2246_v1, %v2212_v32  ;;  %v716_v22 = vpop.permute.xlu0 %715  ;;  %v628_v1 = vsub.f32 %v2319_v39, %v2273_v10 }
 0x126   : > { %v746_v12 = vsub.f32 %v716_v22, %v2317_v37  ;;  %v515_v6 = vsub.f32 %v2270_v31, %v2218_v36 }
 0x127   : > { %v755_v57 = vmul.f32 %v739_v54, %v739_v54  ;;  %v526_v54 = vmul.f32 %v510_v43, %v510_v43  ;;  %v410_v17 = vmul.f32 %v394_v0, %v394_v0  ;;  %v645_v0 = vmul.f32 %v629_v61, %v629_v61 }
 0x128   : > { %v696_v28 = vpop.permute.xlu1 %695  ;;  %v633_v61 = vsub.f32 %v2308_v19, %v2273_v10 }
 0x129   : > { %v2362_v15 = vadd.f32 %v755_v57, %v655_v59  ;;  %v741_v40 = vsub.f32 %v696_v28, %v2317_v37  ;;  %v642_v59 = vmul.f32 %v626_v52, %v626_v52  ;;  %v724_v3 = vpop.permute.xlu0 %723  ;;  %v546_v57 = vadd.f32 %v530_v53, %v414_v33 }
 0x12a   : > { %v542_v39 = vadd.f32 %v526_v54, %v410_v17  ;;  %v532_v28 = vmul.f32 %v516_v7, %v516_v7  ;;  %v748_v18 = vsub.f32 %v724_v3, %v2317_v37  ;;  %v517_v7 = vsub.f32 %v2312_v14, %v2218_v36 }
 0x12b   : > { %v783_v45 = vmin.f32 %v2360_v34, %v2362_v15  ;;  %v757_v44 = vmul.f32 %v741_v40, %v741_v40  ;;  %v413_v40 = vmul.f32 %v397_v42, %v397_v42  ;;  %v662_v52 = vadd.f32 %v646_v5, %v546_v57 }
 0x12c   : > { %v548_v8 = vadd.f32 %v532_v28, %v416_v16  ;;  %v533_v5 = vmul.f32 %v517_v7, %v517_v7 }
 0x12d   : > { %v2372_v47 = vadd.f32 %v757_v44, %v657_v41  ;;  %v604_v48 = vpop.permute.xlu1 %603  ;;  %v2375_v49 = vmin.f32 %v783_v45, %v2365_v29  ;;  %v644_v41 = vmul.f32 %v628_v1, %v628_v1  ;;  %v762_v45 = vmul.f32 %v746_v12, %v746_v12 }
 0x12e   : > { %v658_v44 = vadd.f32 %v642_v59, %v542_v39  ;;  %v764_v1 = vmul.f32 %v748_v18, %v748_v18  ;;  %v631_v31 = vsub.f32 %v604_v48, %v2273_v10  ;;  %v401_v59 = vsub.f32 %v2232_v46, %v2212_v32 }
 0x12f   : > { %v785_v51 = vmin.f32 %v2370_v27, %v2372_v47  ;;  %v660_v33 = vadd.f32 %v644_v41, %v2277_v38  ;;  %v2417_v42 = vadd.f32 %v762_v45, %v662_v52  ;;  %v545_v25 = vadd.f32 %v529_v20, %v413_v40 }
 0x130   : > { %v649_v45 = vmul.f32 %v633_v61, %v633_v61 }
 0x131   : > { %v608_v58 = vpop.permute.xlu1 %607  ;;  %v661_v23 = vadd.f32 %v645_v0, %v545_v25  ;;  %v2467_v25 = vadd.s32 120, %v2197_v24 }
 0x132   : > { %v632_v9 = vsub.f32 %v608_v58, %v2273_v10  ;;  %v399_v58 = vsub.f32 %v2300_v11, %v2212_v32 }
 0x134   : > { %v648_v43 = vmul.f32 %v632_v9, %v632_v9  ;;  %v531_v9 = vmul.f32 %v515_v6, %v515_v6  ;;  %v415_v14 = vmul.f32 %v399_v58, %v399_v58 }
 0x136   : > { %v700_v13 = vpop.permute.xlu1 %699  ;;  %v664_v12 = vadd.f32 %v648_v43, %v548_v8  ;;  %v547_v28 = vadd.f32 %v531_v9, %v415_v14  ;;  %v2473_v14 = vadd.s32 32, %v2197_v24 }
 0x137   : > { %v742_v50 = vsub.f32 %v700_v13, %v2317_v37  ;;  %v417_v13 = vmul.f32 %v401_v59, %v401_v59  ;;  %v2464_v59 = vadd.s32 112, %v2197_v24 }
 0x138   : > { %v780_v57 = vadd.f32 %v764_v1, %v664_v12  ;;  %v2446_v1 = vadd.s32 16, %v2197_v24  ;;  %v2455_v12 = vadd.s32 56, %v2197_v24 }
 0x139   : > { %v758_v26 = vmul.f32 %v742_v50, %v742_v50  ;;  %v549_v18 = vadd.f32 %v533_v5, %v417_v13 }
 0x13a   : > { %v708_v22 = vpop.permute.xlu1 %707 }
 0x13b   : > { %v2411_v53 = vadd.f32 %v758_v26, %v658_v44  ;;  %v744_v54 = vsub.f32 %v708_v22, %v2317_v37  ;;  %v665_v20 = vadd.f32 %v649_v45, %v549_v18  ;;  %v2518_v18 = vadd.s32 96, %v2197_v24 }
 0x13d   : > { %v786_v11 = vmin.f32 %v782_v2, %v2411_v53  ;;  %v760_v17 = vmul.f32 %v744_v54, %v744_v54  ;;  %v647_v2 = vmul.f32 %v631_v31, %v631_v31  ;;  %v2449_v31 = vadd.s32 24, %v2197_v24 }
 0x13e   : > { %v712_v36 = vpop.permute.xlu1 %711 }
 0x13f   : > { %v790_v38 = vmin.f32 %v786_v11, %v2417_v42  ;;  %v2427_v3 = vadd.f32 %v760_v17, %v660_v33  ;;  %v745_v48 = vsub.f32 %v712_v36, %v2317_v37  ;;  %v663_v44 = vadd.f32 %v647_v2, %v547_v28 }
 0x140   : > { %v2458_v11 = vadd.s32 80, %v2197_v24  ;;  %v2461_v17 = vadd.s32 88, %v2197_v24  ;;  %v2470_v36 = vadd.s32 8, %v2197_v24 }
 0x141   : > { %v788_v32 = vmin.f32 %v784_v4, %v2427_v3  ;;  %v761_v46 = vmul.f32 %v745_v48, %v745_v48  ;;  %v2479_v48 = vadd.s32 64, %v2197_v24 }
 0x142   : > { %v720_v39 = vpop.permute.xlu1 %719 }
 0x143   : > { %v792_v50 = vmin.f32 %v788_v32, %v780_v57  ;;  %v777_v40 = vadd.f32 %v761_v46, %v661_v23  ;;  %v747_v41 = vsub.f32 %v720_v39, %v2317_v37  ;;  %v2482_v23 = vadd.s32 72, %v2197_v24 }
 0x145   : > { %v789_v10 = vmin.f32 %v785_v51, %v777_v40  ;;  %v763_v19 = vmul.f32 %v747_v41, %v747_v41 }
 0x146   : > { %v728_v16 = vpop.permute.xlu1 %727 }
 0x147   : > { %v2440_v43 = vadd.f32 %v763_v19, %v663_v44  ;;  %v749_v4 = vsub.f32 %v728_v16, %v2317_v37 }
 0x149   : > { %v791_v26 = vmin.f32 %v2375_v49, %v2440_v43  ;;  %v765_v6 = vmul.f32 %v749_v4, %v749_v4  ;;  %v2452_v49 = vadd.s32 48, %v2197_v24 }
 0x14b   : > { %v794_v0 = vmin.f32 %v790_v38, %v791_v26  ;;  %v781_v52 = vadd.f32 %v765_v6, %v665_v20  ;;  %v2476_v38 = vadd.s32 40, %v2197_v24 }
 0x14d   : > { %v793_v22 = vmin.f32 %v789_v10, %v781_v52 }
 0x14f   : > { %v795_v58 = vmin.f32 %v792_v50, %v793_v22 }
 0x151   : > { %v796_v8 = vmin.f32 %v794_v0, %v795_v58 }
 0x153   : > { %v797_v54 = vrot.slane %v796_v8, 4 }
 0x155   : > { %v798_v7 = vmin.f32 %v796_v8, %v797_v54 }
 0x157   : > { %v799_v33 = vrot.slane %v798_v7, 2 }
 0x159   : > { %v800_v51 = vmin.f32 %v798_v7, %v799_v33  ;;  %v1903_v33 = vmov 1.0|1.0  }
 0x15b   : > { %v801_v37 = vrot.slane %v800_v51, 1 }
 0x15d   : > { %v802_v9 = vmin.f32 %v800_v51, %v801_v37  ;;  %v956_v37 = vpop.trf.xlu0 }
 0x15f   : > { %vm822_vm2 = vcmp.eq.f32.partialorder %v2348_v63, %v802_v9  ;;  %vm823_vm3 = vcmp.eq.f32.partialorder %v2370_v27, %v802_v9  ;;  %vm826_vm4 = vcmp.eq.f32.partialorder %v2346_v62, %v802_v9  ;;  %vm827_vm5 = vcmp.eq.f32.partialorder %v2372_v47, %v802_v9 }
 0x160   : > { %vm830_vm6 = vcmp.eq.f32.partialorder %v2427_v3, %v802_v9  ;;  %vm831_vm7 = vcmp.eq.f32.partialorder %v777_v40, %v802_v9  ;;  %vm834_vm8 = vcmp.eq.f32.partialorder %v780_v57, %v802_v9  ;;  %vm835_vm9 = vcmp.eq.f32.partialorder %v781_v52, %v802_v9 }
 0x161   : > { %v838_v61 = vsel %vm822_vm2, %v2446_v1, 128  ;;  %v839_v5 = vsel %vm823_vm3, %v2449_v31, 128  ;;  %v842_v2 = vsel %vm826_vm4, %v2452_v49, 128  ;;  %v843_v32 = vsel %vm827_vm5, %v2455_v12, 128 }
 0x162   : > { %v846_v63 = vsel %vm830_vm6, %v2458_v11, 128  ;;  %v847_v27 = vsel %vm831_vm7, %v2461_v17, 128  ;;  %v850_v62 = vsel %vm834_vm8, %v2464_v59, 128  ;;  %v851_v47 = vsel %vm835_vm9, %v2467_v25, 128 }
 0x163   : > { %vm856_vm10 = vcmp.lt.s32.totalorder %v838_v61, %v842_v2  ;;  %vm858_vm11 = vcmp.lt.s32.totalorder %v839_v5, %v843_v32  ;;  %vm820_vm12 = vcmp.eq.f32.partialorder %v2332_v60, %v802_v9  ;;  %vm821_vm13 = vcmp.eq.f32.partialorder %v2360_v34, %v802_v9 }
 0x164   : > { %v857_v3 = vsel %vm856_vm10, %v838_v61, %v842_v2  ;;  %v859_v57 = vsel %vm858_vm11, %v839_v5, %v843_v32  ;;  %vm824_vm14 = vcmp.eq.f32.partialorder %v2330_v56, %v802_v9  ;;  %vm825_vm15 = vcmp.eq.f32.partialorder %v2362_v15, %v802_v9 }
 0x165   : > { %vm864_vm0 = vcmp.lt.s32.totalorder %v857_v3, %v846_v63  ;;  %vm866_vm1 = vcmp.lt.s32.totalorder %v859_v57, %v847_v27  ;;  %vm828_vm2 = vcmp.eq.f32.partialorder %v2411_v53, %v802_v9  ;;  %vm829_vm3 = vcmp.eq.f32.partialorder %v2365_v29, %v802_v9 }
 0x166   : > { %v865_v46 = vsel %vm864_vm0, %v857_v3, %v846_v63  ;;  %v867_v13 = vsel %vm866_vm1, %v859_v57, %v847_v27  ;;  %vm832_vm4 = vcmp.eq.f32.partialorder %v2417_v42, %v802_v9  ;;  %vm833_vm5 = vcmp.eq.f32.partialorder %v2440_v43, %v802_v9  ;;  %v1081_v9 = vld [vmem:[#allocation2 + $0x70] sm:$0xff] }
 0x167   : > { %vm872_vm6 = vcmp.lt.s32.totalorder %v865_v46, %v850_v62  ;;  %vm874_vm7 = vcmp.lt.s32.totalorder %v867_v13, %v851_v47  ;;  %v836_v39 = vsel %vm820_vm12, %v2197_v24, 128  ;;  %v837_v28 = vsel %vm821_vm13, %v2470_v36, 128 }
 0x168   : > { %v873_v50 = vsel %vm872_vm6, %v865_v46, %v850_v62  ;;  %v875_v40 = vsel %vm874_vm7, %v867_v13, %v851_v47  ;;  %v840_v41 = vsel %vm824_vm14, %v2473_v14, 128  ;;  %v841_v45 = vsel %vm825_vm15, %v2476_v38, 128 }
 0x169   : > { %vm878_vm8 = vcmp.lt.s32.totalorder %v873_v50, %v875_v40  ;;  %v2521_v60 = vadd.s32 104, %v2197_v24  ;;  %vm852_vm9 = vcmp.lt.s32.totalorder %v836_v39, %v840_v41  ;;  %vm854_vm10 = vcmp.lt.s32.totalorder %v837_v28, %v841_v45 }
 0x16a   : > { %v879_v44 = vsel %vm878_vm8, %v873_v50, %v875_v40  ;;  %v844_v34 = vsel %vm828_vm2, %v2479_v48, 128  ;;  %v845_v56 = vsel %vm829_vm3, %v2482_v23, 128  ;;  %v853_v15 = vsel %vm852_vm9, %v836_v39, %v840_v41 }
 0x16b   : > { %v855_v10 = vsel %vm854_vm10, %v837_v28, %v841_v45  ;;  %vm860_vm11 = vcmp.lt.s32.totalorder %v853_v15, %v844_v34  ;;  %v848_v19 = vsel %vm832_vm4, %v2518_v18, 128  ;;  %v849_v16 = vsel %vm833_vm5, %v2521_v60, 128 }
 0x16c   : > { %vm862_vm12 = vcmp.lt.s32.totalorder %v855_v10, %v845_v56  ;;  %v861_v4 = vsel %vm860_vm11, %v853_v15, %v844_v34  ;;  %v1044_v52 = vand.u32 127, %v382_v21  ;;  %v1046_v43 = vstv %s1510_s10 }
 0x16d   : > { %v863_v53 = vsel %vm862_vm12, %v855_v10, %v845_v56  ;;  %vm868_vm13 = vcmp.lt.s32.totalorder %v861_v4, %v848_v19 }
 0x16e   : > { %vm870_vm14 = vcmp.lt.s32.totalorder %v863_v53, %v849_v16  ;;  %v869_v26 = vsel %vm868_vm13, %v861_v4, %v848_v19  ;;  %v2537_v8 = vadd.s32 %v1046_v43, %v1044_v52  ;;  %v1070_v43 = vld [vmem:[#allocation2 + $0x18] sm:$0xff] }
 0x16f   : > { %v871_v29 = vsel %vm870_vm14, %v863_v53, %v849_v16  ;;  %v1067_v16 = vld [vmem:[#allocation2] sm:$0xff] }
 0x170   : > { %vm876_vm15 = vcmp.lt.s32.totalorder %v869_v26, %v871_v29  ;;  %vm1048_vm4 = vcmp.lt.s32.totalorder %v2537_v8, 256 }
 0x171   : > { %v877_v20 = vsel %vm876_vm15, %v869_v26, %v871_v29  ;;  %v1068_v29 = vld [vmem:[#allocation2 + $0x8] sm:$0xff] }
 0x172   : > { %vm880_vm0 = vcmp.lt.s32.totalorder %v877_v20, %v879_v44 }
 0x173   : > { %v881_v6 = vsel %vm880_vm0, %v877_v20, %v879_v44 }
 0x174   : > { %v882_v0 = vrot.slane %v881_v6, 4 }
 0x176   : > { %vm883_vm1 = vcmp.lt.s32.totalorder %v881_v6, %v882_v0 }
 0x177   : > { %v884_v42 = vsel %vm883_vm1, %v881_v6, %v882_v0 }
 0x178   : > { %v885_v22 = vrot.slane %v884_v42, 2 }
 0x17a   : > { %vm886_vm2 = vcmp.lt.s32.totalorder %v884_v42, %v885_v22 }
 0x17b   : > { %v887_v58 = vsel %vm886_vm2, %v884_v42, %v885_v22 }
 0x17c   : > { %v888_v54 = vrot.slane %v887_v58, 1 }
 0x17e   : > { %vm889_vm3 = vcmp.lt.s32.totalorder %v887_v58, %v888_v54 }
 0x17f   : > { %v2539_v7 = vsel %vm889_vm3, %v887_v58, %v888_v54  ;;  %v1071_v54 = vld [vmem:[#allocation2 + $0x20] sm:$0xff] }
 0x180   : > { %891 = vst [vmem:[%s2916_s28] sm:$0x1] %v2539_v7  ;;  %vm892_vm5 = vcmp.eq.s32.totalorder %v2197_v24, %v2539_v7  ;;  %vm893_vm6 = vcmp.eq.s32.totalorder %v2470_v36, %v2539_v7  ;;  %vm906_vm7 = vcmp.eq.s32.totalorder %v2464_v59, %v2539_v7  ;;  %vm894_vm9 = vcmp.eq.s32.totalorder %v2446_v1, %v2539_v7 }
 0x181   : > { %vm1591_vm8 = vmpackc.low %vm893_vm6, %vm892_vm5  ;;  %v1492_v21 = vsel %vm906_vm7, 1.0, %v1902_v35  ;;  %vm895_vm10 = vcmp.eq.s32.totalorder %v2449_v31, %v2539_v7  ;;  %vm896_vm12 = vcmp.eq.s32.totalorder %v2473_v14, %v2539_v7  ;;  %vm897_vm13 = vcmp.eq.s32.totalorder %v2476_v38, %v2539_v7 }
 0x182   : > { %1592 = vmatpush3.bf16.msk.msra.mxu0 %vm1591_vm8, %v1903_v33  ;;  %v1065_v51 = vsel %vm1048_vm4, %v1492_v21, 0.0  ;;  %vm1594_vm11 = vmpackc.low %vm895_vm10, %vm894_vm9  ;;  %vm898_vm15 = vcmp.eq.s32.totalorder %v2452_v49, %v2539_v7  ;;  %vm899_vm0 = vcmp.eq.s32.totalorder %v2455_v12, %v2539_v7  ;;  %vm2913_vm2 = vcmp.eq.s32.totalorder %v2479_v48, %v2539_v7 }
 0x183   : > { %1111 = vadd.xlane.f32.xlu0 %v1065_v51  ;;  %1593 = vmatprep.subr.bf16.mxu0 %v1900_v55  ;;  %vm1597_vm14 = vmpackc.low %vm897_vm13, %vm896_vm12  ;;  %vm2912_vm3 = vcmp.eq.s32.totalorder %v2482_v23, %v2539_v7  ;;  %v1478_v62 = vsel %vm892_vm5, 1.0, %v1902_v35  ;;  %v1480_v57 = vsel %vm894_vm9, 1.0, %v1902_v35  ;;  %v1481_v46 = vsel %vm895_vm10, 1.0, %v1902_v35 }
 0x184   : > { %vm1600_vm1 = vmpackc.low %vm899_vm0, %vm898_vm15  ;;  %v1051_v47 = vsel %vm1048_vm4, %v1478_v62, 0.0  ;;  %v1053_v24 = vsel %vm1048_vm4, %v1480_v57, 0.0  ;;  %v1054_v36 = vsel %vm1048_vm4, %v1481_v46, 0.0  ;;  %v1482_v13 = vsel %vm896_vm12, 1.0, %v1902_v35  ;;  %v1076_v62 = vld [vmem:[#allocation2 + $0x48] sm:$0xff]  ;;  %v1078_v46 = vld [vmem:[#allocation2 + $0x58] sm:$0xff] }
 0x185   : > { %vm1603_vm8 = vmpackc.low %vm2912_vm3, %vm2913_vm2  ;;  %vm904_vm3 = vcmp.eq.s32.totalorder %v2518_v18, %v2539_v7  ;;  %v1055_v1 = vsel %vm1048_vm4, %v1482_v13, 0.0  ;;  %v1483_v39 = vsel %vm897_vm13, 1.0, %v1902_v35  ;;  %v1484_v28 = vsel %vm898_vm15, 1.0, %v1902_v35 }
 0x186   : > { %1595 = vmatpush3.bf16.msk.msra.mxu0 %vm1594_vm11, %v1903_v33  ;;  %vm2915_vm11 = vcmp.eq.s32.totalorder %v2458_v11, %v2539_v7  ;;  %v1056_v31 = vsel %vm1048_vm4, %v1483_v39, 0.0  ;;  %v1057_v14 = vsel %vm1048_vm4, %v1484_v28, 0.0  ;;  %v1485_v50 = vsel %vm899_vm0, 1.0, %v1902_v35  ;;  %v1080_v28 = vld [vmem:[#allocation2 + $0x68] sm:$0xff] }
 0x187   : > { %1596 = vmatprep.subr.bf16.mxu0 %v1900_v55  ;;  %v1058_v38 = vsel %vm1048_vm4, %v1485_v50, 0.0  ;;  %vm2925_vm5 = vcmp.eq.s32.totalorder %v2479_v48, %v2539_v7  ;;  %vm2928_vm9 = vcmp.eq.s32.totalorder %v2461_v17, %v2539_v7  ;;  %v1490_v34 = vsel %vm904_vm3, 1.0, %v1902_v35 }
 0x188   : > { %v1486_v40 = vsel %vm2925_vm5, 1.0, %v1902_v35  ;;  %v1489_v44 = vsel %vm2928_vm9, 1.0, %v1902_v35 }
 0x189   : > { %v1059_v49 = vsel %vm1048_vm4, %v1486_v40, 0.0 }
 0x18a   : > { %1598 = vmatpush3.bf16.msk.msra.mxu0 %vm1597_vm14, %v1903_v33  ;;  %vm2914_vm14 = vcmp.eq.s32.totalorder %v2461_v17, %v2539_v7 }
 0x18b   : > { %1599 = vmatprep.subr.bf16.mxu0 %v1900_v55 }
 0x18e   : > { %1601 = vmatpush3.bf16.msk.msra.mxu0 %vm1600_vm1, %v1903_v33  ;;  %vm1606_vm1 = vmpackc.low %vm2914_vm14, %vm2915_vm11  ;;  %vm1131_vm11 = vcmask 7168  }
 0x18f   : > { %1602 = vmatprep.subr.bf16.mxu0 %v1900_v55 }
 0x192   : > { %1604 = vmatpush3.bf16.msk.msra.mxu0 %vm1603_vm8, %v1903_v33  ;;  %vm905_vm8 = vcmp.eq.s32.totalorder %v2521_v60, %v2539_v7 }
 0x193   : > { %1605 = vmatprep.subr.bf16.mxu0 %v1900_v55  ;;  %vm1609_vm2 = vmpackc.low %vm905_vm8, %vm904_vm3  ;;  %v1491_v56 = vsel %vm905_vm8, 1.0, %v1902_v35 }
 0x194   : > { %v1064_v17 = vsel %vm1048_vm4, %v1491_v56, 0.0 }
 0x196   : > { %1607 = vmatpush3.bf16.msk.msra.mxu0 %vm1606_vm1, %v1903_v33  ;;  %vm907_vm1 = vcmp.eq.s32.totalorder %v2467_v25, %v2539_v7  ;;  %v1069_v25 = vld [vmem:[#allocation2 + $0x10] sm:$0xff] }
 0x197   : > { %1608 = vmatprep.subr.bf16.mxu0 %v1900_v55  ;;  %vm1612_vm14 = vmpackc.low %vm907_vm1, %vm906_vm7  ;;  %vm2927_vm7 = vcmp.eq.s32.totalorder %v2458_v11, %v2539_v7  ;;  %v1063_v11 = vsel %vm1048_vm4, %v1490_v34, 0.0  ;;  %v1493_v15 = vsel %vm907_vm1, 1.0, %v1902_v35  ;;  %v1904_v34 = vmov (!%p2033_p7), 0.0  }
 0x198   : > { %v1488_v45 = vsel %vm2927_vm7, 1.0, %v1902_v35  ;;  %v1066_v18 = vsel %vm1048_vm4, %v1493_v15, 0.0 }
 0x199   : > { %v1061_v48 = vsel %vm1048_vm4, %v1488_v45, 0.0 }
 0x19a   : > { %1610 = vmatpush3.bf16.msk.msra.mxu0 %vm1609_vm2, %v1903_v33  ;;  %vm1152_vm2 = vcmask 1043456  }
 0x19b   : > { %1611 = vmatprep.subr.bf16.mxu0 %v1900_v55 }
 0x19e   : > { %1613 = vmatpush3.bf16.msk.msra.mxu0 %vm1612_vm14, %v1903_v33  ;;  %v1072_v33 = vld [vmem:[#allocation2 + $0x28] sm:$0xff] }
 0x1a1   : > { %1588 = vmatmul.mubr.f32.vlgmr.msra.gmra.mrb[0].mxu0 %v956_v37 }
 0x210   : > { %v1112_v61 = vpop.xlane.xlu0 %1111 }
 0x211   : > { %v1129_v5 = vadd.f32 %v1112_v61, %v1081_v9  ;;  %v1073_v9 = vld [vmem:[#allocation2 + $0x30] sm:$0xff] }
 0x213   : > { %1146 = vst.msk [vmem:[#allocation2 + $0x70] sm:$0xff] %vm1131_vm11, %v1129_v5 }
 0x274   : > { %v1038_v2 = vpop.f32.mrb[0].mxu0 }
 0x275   : > { %1042 = vst [vmem:[%s2037_s29] sm:$0xf] %v1038_v2  ;;  %v1148_v55 = vsub.f32 %v1038_v2, %v2206_v30  ;;  %v1589_v32 = vpop.f32.mrb[1].mxu0  ;;  %v1479_v30 = vsel %vm893_vm6, 1.0, %v1902_v35  ;;  %vm2926_vm6 = vcmp.eq.s32.totalorder %v2482_v23, %v2539_v7  ;;  %v1062_v23 = vsel %vm1048_vm4, %v1489_v44, 0.0  ;;  %v1074_v2 = vld [vmem:[#allocation2 + $0x38] sm:$0xff] }
 0x276   : > { %v1052_v3 = vsel %vm1048_vm4, %v1479_v30, 0.0  ;;  %v1487_v41 = vsel %vm2926_vm6, 1.0, %v1902_v35 }
 0x277   : > { %v1150_v63 = vmul.f32 %v1148_v55, %v1148_v55  ;;  %v1060_v12 = vsel %vm1048_vm4, %v1487_v41, 0.0 }
 0x279   : > { %v1151_v59 = vsel %vm1048_vm4, %v1150_v63, 0.0  ;;  %v1075_v63 = vld [vmem:[#allocation2 + $0x40] sm:$0xff] }
 0x27a   : > { %v1153_v27 = vsel %vm1152_vm2, %v1151_v59, 0.0 }
 0x27b   : > { %1154 = vadd.xlane.f32.xlu1 %v1153_v27 }
 0x27f   : > { %1083 = vadd.xlane.f32.xlu1 %v1051_v47 }
 0x283   : > { %1085 = vadd.xlane.f32.xlu1 %v1052_v3  ;;  %v1077_v3 = vld [vmem:[#allocation2 + $0x50] sm:$0xff] }
 0x287   : > { %1087 = vadd.xlane.f32.xlu1 %v1053_v24 }
 0x28b   : > { %1089 = vadd.xlane.f32.xlu1 %v1054_v36 }
 0x28f   : > { %1091 = vadd.xlane.f32.xlu1 %v1055_v1  ;;  %v1079_v1 = vld [vmem:[#allocation2 + $0x60] sm:$0xff] }
 0x293   : > { %1093 = vadd.xlane.f32.xlu1 %v1056_v31 }
 0x297   : > { %1095 = vadd.xlane.f32.xlu1 %v1057_v14 }
 0x29b   : > { %1097 = vadd.xlane.f32.xlu1 %v1058_v38  ;;  %v1082_v38 = vld [vmem:[#allocation2 + $0x78] sm:$0xff] }
 0x29f   : > { %1099 = vadd.xlane.f32.xlu1 %v1059_v49 }
 0x2a3   : > { %1101 = vadd.xlane.f32.xlu1 %v1060_v12 }
 0x2a7   : > { %1103 = vadd.xlane.f32.xlu1 %v1061_v48 }
 0x2ab   : > { %1105 = vadd.xlane.f32.xlu1 %v1062_v23 }
 0x2af   : > { %1107 = vadd.xlane.f32.xlu1 %v1063_v11 }
 0x2b3   : > { %1109 = vadd.xlane.f32.xlu1 %v1064_v17 }
 0x2b7   : > { %1113 = vadd.xlane.f32.xlu1 %v1066_v18 }
 0x308   : > { %v1155_v10 = vpop.xlane.xlu1 %1154 }
 0x309   : > { %v1156_v19 = vrot.slane %v1155_v10, 4 }
 0x30b   : > { %v1157_v4 = vadd.f32 %v1156_v19, %v1155_v10 }
 0x30c   : > { %v1084_v53 = vpop.xlane.xlu1 %1083 }
 0x30d   : > { %v1158_v60 = vrot.slane %v1157_v4, 2  ;;  %v1115_v26 = vadd.f32 %v1084_v53, %v1067_v16 }
 0x30f   : > { %1132 = vst.msk [vmem:[#allocation2] sm:$0xff] %vm1131_vm11, %v1115_v26  ;;  %v1159_v20 = vadd.f32 %v1158_v60, %v1157_v4 }
 0x310   : > { %v1086_v6 = vpop.xlane.xlu1 %1085 }
 0x311   : > { %v1116_v0 = vadd.f32 %v1086_v6, %v1068_v29  ;;  %v1160_v42 = vrot.slane %v1159_v20, 1 }
 0x313   : > { %1133 = vst.msk [vmem:[#allocation2 + $0x8] sm:$0xff] %vm1131_vm11, %v1116_v0  ;;  %v1161_v35 = vadd.f32 %v1160_v42, %v1159_v20 }
 0x314   : > { %v1088_v52 = vpop.xlane.xlu1 %1087 }
 0x315   : > { %v1117_v22 = vadd.f32 %v1088_v52, %v1069_v25  ;;  %1614 = vpush %v1161_v35 }
 0x316   : > { %v1168_v41 = vld [vmem:[#allocation2] sm:$0xff] (!%p2033_p7) }
 0x317   : > { %1134 = vst.msk [vmem:[#allocation2 + $0x10] sm:$0xff] %vm1131_vm11, %v1117_v22  ;;  %vm1184_vm4 = vcmp.eq.f32.partialorder (!%p2033_p7), %v1168_v41, 0.0 }
 0x318   : > { %v1090_v58 = vpop.xlane.xlu1 %1089  ;;  %v1511_v11 = vsel (!%p2033_p7), %vm1184_vm4, 1.0, %v1904_v34 }
 0x319   : > { %v1118_v8 = vadd.f32 %v1090_v58, %v1070_v43  ;;  %v1232_v10 = vsel (!%p2033_p7), %vm1131_vm11, %v1511_v11, 0.0 }
 0x31a   : > { %v1169_v12 = vld [vmem:[#allocation2 + $0x8] sm:$0xff] (!%p2033_p7) }
 0x31b   : > { %1135 = vst.msk [vmem:[#allocation2 + $0x18] sm:$0xff] %vm1131_vm11, %v1118_v8  ;;  %vm1185_vm10 = vcmp.eq.f32.partialorder (!%p2033_p7), %v1169_v12, 0.0 }
 0x31c   : > { %v1092_v7 = vpop.xlane.xlu1 %1091  ;;  %v1512_v56 = vsel (!%p2033_p7), %vm1185_vm10, 1.0, %v1904_v34 }
 0x31d   : > { %v1119_v21 = vadd.f32 %v1092_v7, %v1071_v54  ;;  %v1233_v19 = vsel (!%p2033_p7), %vm1131_vm11, %v1512_v56, 0.0 }
 0x31e   : > { %v1170_v45 = vld [vmem:[#allocation2 + $0x10] sm:$0xff] (!%p2033_p7)  ;;  %v1234_v60 = vadd.f32 (!%p2033_p7), %v1233_v19, %v1232_v10 }
 0x31f   : > { %1136 = vst.msk [vmem:[#allocation2 + $0x20] sm:$0xff] %vm1131_vm11, %v1119_v21  ;;  %vm1186_vm12 = vcmp.eq.f32.partialorder (!%p2033_p7), %v1170_v45, 0.0 }
 0x320   : > { %v1094_v51 = vpop.xlane.xlu1 %1093  ;;  %v1513_v17 = vsel (!%p2033_p7), %vm1186_vm12, 1.0, %v1904_v34 }
 0x321   : > { %v1120_v37 = vadd.f32 %v1094_v51, %v1072_v33  ;;  %v1235_v16 = vsel (!%p2033_p7), %vm1131_vm11, %v1513_v17, 0.0 }
 0x322   : > { %v1171_v48 = vld [vmem:[#allocation2 + $0x18] sm:$0xff] (!%p2033_p7)  ;;  %v1236_v6 = vadd.f32 (!%p2033_p7), %v1235_v16, %v1234_v60 }
 0x323   : > { %1137 = vst.msk [vmem:[#allocation2 + $0x28] sm:$0xff] %vm1131_vm11, %v1120_v37  ;;  %vm1187_vm13 = vcmp.eq.f32.partialorder (!%p2033_p7), %v1171_v48, 0.0 }
 0x324   : > { %v1096_v61 = vpop.xlane.xlu1 %1095  ;;  %v1514_v18 = vsel (!%p2033_p7), %vm1187_vm13, 1.0, %v1904_v34 }
 0x325   : > { %v1121_v5 = vadd.f32 %v1096_v61, %v1073_v9  ;;  %v1237_v26 = vsel (!%p2033_p7), %vm1131_vm11, %v1514_v18, 0.0 }
 0x326   : > { %v1172_v44 = vld [vmem:[#allocation2 + $0x20] sm:$0xff] (!%p2033_p7)  ;;  %v1238_v35 = vadd.f32 (!%p2033_p7), %v1237_v26, %v1236_v6 }
 0x327   : > { %1138 = vst.msk [vmem:[#allocation2 + $0x30] sm:$0xff] %vm1131_vm11, %v1121_v5  ;;  %vm1188_vm15 = vcmp.eq.f32.partialorder (!%p2033_p7), %v1172_v44, 0.0 }
 0x328   : > { %v1098_v55 = vpop.xlane.xlu1 %1097  ;;  %v1515_v53 = vsel (!%p2033_p7), %vm1188_vm15, 1.0, %v1904_v34 }
 0x329   : > { %v1122_v32 = vadd.f32 %v1098_v55, %v1074_v2  ;;  %v1239_v0 = vsel (!%p2033_p7), %vm1131_vm11, %v1515_v53, 0.0 }
 0x32a   : > { %v1173_v23 = vld [vmem:[#allocation2 + $0x28] sm:$0xff] (!%p2033_p7)  ;;  %v1240_v58 = vadd.f32 (!%p2033_p7), %v1239_v0, %v1238_v35 }
 0x32b   : > { %1139 = vst.msk [vmem:[#allocation2 + $0x38] sm:$0xff] %vm1131_vm11, %v1122_v32  ;;  %vm1189_vm0 = vcmp.eq.f32.partialorder (!%p2033_p7), %v1173_v23, 0.0 }
 0x32c   : > { %v1100_v59 = vpop.xlane.xlu1 %1099  ;;  %v1516_v20 = vsel (!%p2033_p7), %vm1189_vm0, 1.0, %v1904_v34 }
 0x32d   : > { %v1123_v27 = vadd.f32 %v1100_v59, %v1075_v63  ;;  %v1241_v52 = vsel (!%p2033_p7), %vm1131_vm11, %v1516_v20, 0.0  ;;  %v1182_v63 = vld [vmem:[#allocation2 + $0x70] sm:$0xff] (!%p2033_p7) }
 0x32e   : > { %v1174_v15 = vld [vmem:[#allocation2 + $0x30] sm:$0xff] (!%p2033_p7)  ;;  %v1242_v21 = vadd.f32 (!%p2033_p7), %v1241_v52, %v1240_v58  ;;  %vm1198_vm9 = vcmp.eq.f32.partialorder (!%p2033_p7), %v1182_v63, 0.0 }
 0x32f   : > { %1140 = vst.msk [vmem:[#allocation2 + $0x40] sm:$0xff] %vm1131_vm11, %v1123_v27  ;;  %vm1190_vm3 = vcmp.eq.f32.partialorder (!%p2033_p7), %v1174_v15, 0.0 }
 0x330   : > { %v1102_v47 = vpop.xlane.xlu1 %1101  ;;  %v1517_v25 = vsel (!%p2033_p7), %vm1190_vm3, 1.0, %v1904_v34 }
 0x331   : > { %v1124_v30 = vadd.f32 %v1102_v47, %v1076_v62  ;;  %v1243_v8 = vsel (!%p2033_p7), %vm1131_vm11, %v1517_v25, 0.0 }
 0x332   : > { %v1175_v4 = vld [vmem:[#allocation2 + $0x38] sm:$0xff] (!%p2033_p7)  ;;  %v1244_v9 = vadd.f32 (!%p2033_p7), %v1243_v8, %v1242_v21 }
 0x333   : > { %1141 = vst.msk [vmem:[#allocation2 + $0x48] sm:$0xff] %vm1131_vm11, %v1124_v30  ;;  %vm1191_vm14 = vcmp.eq.f32.partialorder (!%p2033_p7), %v1175_v4, 0.0 }
 0x334   : > { %v1104_v57 = vpop.xlane.xlu1 %1103  ;;  %v1518_v43 = vsel (!%p2033_p7), %vm1191_vm14, 1.0, %v1904_v34 }
 0x335   : > { %v1125_v24 = vadd.f32 %v1104_v57, %v1077_v3  ;;  %v1245_v33 = vsel (!%p2033_p7), %vm1131_vm11, %v1518_v43, 0.0 }
 0x336   : > { %v1176_v29 = vld [vmem:[#allocation2 + $0x40] sm:$0xff] (!%p2033_p7)  ;;  %v1246_v55 = vadd.f32 (!%p2033_p7), %v1245_v33, %v1244_v9 }
 0x337   : > { %1142 = vst.msk [vmem:[#allocation2 + $0x50] sm:$0xff] %vm1131_vm11, %v1125_v24  ;;  %vm1192_vm8 = vcmp.eq.f32.partialorder (!%p2033_p7), %v1176_v29, 0.0 }
 0x338   : > { %v1106_v36 = vpop.xlane.xlu1 %1105  ;;  %v1519_v7 = vsel (!%p2033_p7), %vm1192_vm8, 1.0, %v1904_v34 }
 0x339   : > { %v1126_v13 = vadd.f32 %v1106_v36, %v1078_v46  ;;  %v1247_v61 = vsel (!%p2033_p7), %vm1131_vm11, %v1519_v7, 0.0 }
 0x33a   : > { %v1177_v42 = vld [vmem:[#allocation2 + $0x48] sm:$0xff] (!%p2033_p7)  ;;  %v1248_v27 = vadd.f32 (!%p2033_p7), %v1247_v61, %v1246_v55 }
 0x33b   : > { %1143 = vst.msk [vmem:[#allocation2 + $0x58] sm:$0xff] %vm1131_vm11, %v1126_v13  ;;  %vm1193_vm1 = vcmp.eq.f32.partialorder (!%p2033_p7), %v1177_v42, 0.0  ;;  %v1525_v13 = vsel (!%p2033_p7), %vm1198_vm9, 1.0, %v1904_v34 }
 0x33c   : > { %v1108_v39 = vpop.xlane.xlu1 %1107  ;;  %v1520_v37 = vsel (!%p2033_p7), %vm1193_vm1, 1.0, %v1904_v34 }
 0x33d   : > { %v1127_v31 = vadd.f32 %v1108_v39, %v1079_v1  ;;  %v1249_v32 = vsel (!%p2033_p7), %vm1131_vm11, %v1520_v37, 0.0 }
 0x33e   : > { %v1178_v22 = vld [vmem:[#allocation2 + $0x50] sm:$0xff] (!%p2033_p7)  ;;  %v1250_v3 = vadd.f32 (!%p2033_p7), %v1249_v32, %v1248_v27 }
 0x33f   : > { %1144 = vst.msk [vmem:[#allocation2 + $0x60] sm:$0xff] %vm1131_vm11, %v1127_v31  ;;  %vm1194_vm2 = vcmp.eq.f32.partialorder (!%p2033_p7), %v1178_v22, 0.0 }
 0x340   : > { %v1110_v14 = vpop.xlane.xlu1 %1109  ;;  %v1521_v2 = vsel (!%p2033_p7), %vm1194_vm2, 1.0, %v1904_v34 }
 0x341   : > { %v1128_v50 = vadd.f32 %v1110_v14, %v1080_v28  ;;  %v1251_v62 = vsel (!%p2033_p7), %vm1131_vm11, %v1521_v2, 0.0  ;;  %v1259_v14 = vsel (!%p2033_p7), %vm1131_vm11, %v1525_v13, 0.0 }
 0x342   : > { %v1179_v54 = vld [vmem:[#allocation2 + $0x58] sm:$0xff] (!%p2033_p7)  ;;  %v1252_v46 = vadd.f32 (!%p2033_p7), %v1251_v62, %v1250_v3 }
 0x343   : > { %1145 = vst.msk [vmem:[#allocation2 + $0x68] sm:$0xff] %vm1131_vm11, %v1128_v50  ;;  %1167 = sbr.rel (%p2033_p7) target bundleno = 1061 (0x425), region = 36  ;;  %vm1195_vm5 = vcmp.eq.f32.partialorder (!%p2033_p7), %v1179_v54, 0.0 }
 0x344   : > { %v1114_v40 = vpop.xlane.xlu1 %1113  ;;  %v1522_v59 = vsel (!%p2033_p7), %vm1195_vm5, 1.0, %v1904_v34 }
 0x345   : > { %v1130_v49 = vadd.f32 %v1114_v40, %v1082_v38  ;;  %v1253_v57 = vsel (!%p2033_p7), %vm1131_vm11, %v1522_v59, 0.0 }
 0x346   : > { %s1615_s16 = spop %1614  ;;  %v1180_v51 = vld [vmem:[#allocation2 + $0x60] sm:$0xff] (!%p2033_p7)  ;;  %v1254_v1 = vadd.f32 (!%p2033_p7), %v1253_v57, %v1252_v46 }
 0x347   : > { %1147 = vst.msk [vmem:[#allocation2 + $0x78] sm:$0xff] %vm1131_vm11, %v1130_v49  ;;  %s1163_s17 = sadd.f32 %s1615_s16, %s1149_s15  ;;  %vm1196_vm6 = vcmp.eq.f32.partialorder (!%p2033_p7), %v1180_v51, 0.0 }
 0x348   : > { %v1523_v30 = vsel (!%p2033_p7), %vm1196_vm6, 1.0, %v1904_v34 }
 0x349   : > { %1165 = sst [smem:[#allocation3]] %s1163_s17  ;;  %v1255_v36 = vsel (!%p2033_p7), %vm1131_vm11, %v1523_v30, 0.0 }
 0x34a   : > { %v1181_v5 = vld [vmem:[#allocation2 + $0x68] sm:$0xff]  ;;  %v1256_v28 = vadd.f32 %v1255_v36, %v1254_v1  ;;  %s1278_s11 = sld [smem:[#allocation3]] }
 0x34b   : > { %vm1197_vm7 = vcmp.eq.f32.partialorder %v1181_v5, 0.0 }
 0x34c   : > { %v1524_v24 = vsel %vm1197_vm7, 1.0, %v1904_v34 }
 0x34d   : > { %v1257_v39 = vsel %vm1131_vm11, %v1524_v24, 0.0 }
 0x34e   : > { %v1183_v47 = vld [vmem:[#allocation2 + $0x78] sm:$0xff]  ;;  %v1258_v50 = vadd.f32 %v1257_v39, %v1256_v28 }
 0x34f   : > { %vm1199_vm4 = vcmp.eq.f32.partialorder %v1183_v47, 0.0 }
 0x350   : > { %v1526_v31 = vsel %vm1199_vm4, 1.0, %v1904_v34  ;;  %v1260_v40 = vadd.f32 %v1259_v14, %v1258_v50  ;;  %s1281_s26 = smul.f32 0.00048828125, %s1278_s11 }
 0x351   : > { %v1261_v38 = vsel %vm1131_vm11, %v1526_v31, 0.0 }
 0x352   : > { %v1262_v49 = vadd.f32 %v1261_v38, %v1260_v40  ;;  %1283 = sst [smem:[#allocation10]] %s1281_s26 }
 0x354   : > { %1263 = vadd.xlane.f32.xlu0 %v1262_v49 }
 0x3e1   : > { %v1264_v41 = vpop.xlane.xlu0 %1263 }
 0x3e2   : > { %v1265_v12 = vrot.slane %v1264_v41, 4 }
 0x3e4   : > { %v1266_v45 = vadd.f32 %v1265_v12, %v1264_v41 }
 0x3e6   : > { %v1267_v48 = vrot.slane %v1266_v45, 2 }
 0x3e8   : > { %v1268_v44 = vadd.f32 %v1267_v48, %v1266_v45 }
 0x3ea   : > { %v1269_v23 = vrot.slane %v1268_v44, 1 }
 0x3ec   : > { %v1270_v11 = vadd.f32 %v1269_v23, %v1268_v44 }
 0x3ee   : > { %1616 = vpush %v1270_v11 }
 0x41f   : > { %s1617_s27 = spop %1616 }
 0x420   : > { %s1272_s6 = smul.f32 100.0, %s1617_s27 }
 0x422   : > { %s1275_s9 = smul.f32 0.0078125, %s1272_s6 }
 0x424   : > { %1277 = sst [smem:[#allocation9]] %s1275_s9 }
 0x425 PF: > { %s1528_s14 = sshll.u32 %s1880_s22, 1  ;;  %s1304_s15 = sshll.u32 %s2037_s29, 4  ;;  %s2788_s15 = int_to_ptr.vmem [resolvable:$true] %s1304_s15 }
 0x426   : > { %s2784_s10 = sadd.s32 %s1876_s21, %s1528_s14  ;;  %s1285_s27 = scalar_lea.sflag [#allocation5], %s2017_s13 }
 0x427   : > { %s1529_s16 = sshll.u32 %s2784_s10, 6  ;;  %s1734_s6 = scalar_lea.vmem %s2788_s15, 64 }
 0x428   : > { %s1302_s26 = scalar_lea.hbm %s2906_s2, %s1529_s16  ;;  %p1735_p9 = scmp.ne.s32.totalorder %s2788_s15, %s1734_s6 }
 0x429   : > { %s1905_s21 = smov [#allocation4]  }
 0x42a   : > { %p1736_p10 = pnand %p1735_p9, %p1996_p3  ;;  %s1738_s22 = sshll.u32 %s1905_s21, 4  ;;  %s1739_s22 = int_to_ptr.vmem [resolvable:$false] %s1738_s22 }
 0x42b   : > { %s1740_s29 = scalar_lea.vmem %s1739_s22, 128  ;;  %p1741_p12 = scmp.lt.s32.totalorder %s2788_s15, %s1739_s22 }
 0x42c   : > { %p1737_p11 = pneg %p1736_p10  ;;  %p1742_p13 = scmp.lt.s32.totalorder %s1740_s29, %s1734_s6 }
 0x42e   : > { %p1743_p0 = por %p1742_p13, %p1741_p12 }
 0x430   : > { %p1744_p1 = pnand %p1743_p0, %p1737_p11 }
 0x432   : > { %1747 = shalt.err (!%p1744_p1)
}
 0x433   : > { %s1748_s9 = scalar_lea.hbm %s1302_s26, 64  ;;  %s1752_s17 = scalar_lea.hbm %s2906_s2, 256 }
 0x434   : > { %p1749_p4 = scmp.ne.s32.totalorder %s1302_s26, %s1748_s9  ;;  %p1753_p7 = scmp.lt.u32.totalorder %s1302_s26, %s2906_s2 }
 0x435   : > { %p1754_p9 = scmp.lt.u32.totalorder %s1752_s17, %s1748_s9  ;;  %p1756_p8 = scmp.lt.u32.totalorder %s1748_s9, %s1302_s26 }
 0x436   : > { %p1750_p5 = pnand %p1749_p4, %p1996_p3 }
 0x437   : > { %p1755_p10 = por %p1754_p9, %p1753_p7 }
 0x438   : > { %p1751_p6 = pneg %p1750_p5 }
 0x439   : > { %p1757_p12 = por %p1756_p8, %p1755_p10 }
 0x43b   : > { %p1758_p11 = pnand %p1757_p12, %p1751_p6 }
 0x43d   : > { %1761 = shalt.err (!%p1758_p11)
}
 0x43e   : > { %1618 = dma.vmem_to_hbm [thread:$0]  (%p1996_p3), %s2788_s15, 64, %s1302_s26, %s1285_s27  }
 0x43f   : > { %s1531_s6 = sshll.u32 %s2784_s10, 4  ;;  %s2929_s21 = scalar_lea.vmem [#allocation7], %s2017_s13 }
 0x440   : > { %s1319_s22 = sshll.u32 %s2929_s21, 4  ;;  %s2816_s14 = scalar_lea.hbm %s2907_s3, %s1531_s6  ;;  %s1320_s22 = int_to_ptr.vmem [resolvable:$true] %s1319_s22 }
 0x441   : > { %s1290_s9 = scalar_lea.sflag [#allocation8], %s2017_s13  ;;  %s1762_s16 = scalar_lea.vmem %s1320_s22, 16 }
 0x442   : > { %p1763_p8 = scmp.ne.s32.totalorder %s1320_s22, %s1762_s16  ;;  %s1906_s17 = smov [#allocation7]  }
 0x443   : > { %s1766_s11 = sshll.u32 %s1906_s17, 4  ;;  %s1767_s11 = int_to_ptr.vmem [resolvable:$false] %s1766_s11 }
 0x444   : > { %p1764_p13 = pnand %p1763_p8, %p1996_p3  ;;  %s1768_s0 = scalar_lea.vmem %s1767_s11, 32 }
 0x445   : > { %p1769_p1 = scmp.lt.s32.totalorder %s1320_s22, %s1767_s11  ;;  %p1770_p4 = scmp.lt.s32.totalorder %s1768_s0, %s1762_s16 }
 0x446   : > { %p1765_p0 = pneg %p1764_p13 }
 0x447   : > { %p1771_p5 = por %p1770_p4, %p1769_p1 }
 0x449   : > { %p1772_p6 = pnand %p1771_p5, %p1765_p0 }
 0x44b   : > { %1775 = shalt.err (!%p1772_p6)
}
 0x44c   : > { %s1776_s13 = scalar_lea.hbm %s2816_s14, 16  ;;  %s1780_s26 = scalar_lea.hbm %s2907_s3, 64 }
 0x44d   : > { %p1777_p7 = scmp.ne.s32.totalorder %s2816_s14, %s1776_s13  ;;  %p1781_p12 = scmp.lt.u32.totalorder %s2816_s14, %s2907_s3 }
 0x44e   : > { %p1782_p11 = scmp.lt.u32.totalorder %s1780_s26, %s1776_s13  ;;  %p1784_p13 = scmp.lt.u32.totalorder %s1776_s13, %s2816_s14 }
 0x44f   : > { %p1778_p9 = pnand %p1777_p7, %p1996_p3 }
 0x450   : > { %p1783_p8 = por %p1782_p11, %p1781_p12 }
 0x451   : > { %p1779_p10 = pneg %p1778_p9 }
 0x452   : > { %p1785_p0 = por %p1784_p13, %p1783_p8 }
 0x454   : > { %p1786_p1 = pnand %p1785_p0, %p1779_p10 }
 0x456   : > { %1789 = shalt.err (!%p1786_p1)
}
 0x457   : > { %1619 = dma.vmem_to_hbm [thread:$0]  (%p1996_p3), %s1320_s22, 16, %s2816_s14, %s1290_s9  }
 0x458   : > { %s1790_s29 = scalar_lea.hbm %s2908_s4, 16 }
 0x459   : > { %p1791_p4 = scmp.ne.s32.totalorder %s2908_s4, %s1790_s29  ;;  %p1796_p7 = scmp.lt.u32.totalorder %s1790_s29, %s2908_s4 }
 0x45b   : > { %p1792_p5 = pnand %p1791_p4, %p1985_p2 }
 0x45d   : > { %p1793_p6 = pneg %p1792_p5 }
 0x45f   : > { %p1798_p9 = pnand %p1796_p7, %p1793_p6 }
 0x461   : > { %1801 = shalt.err (!%p1798_p9)
}
 0x462   : > { %s1907_s7 = smov [#allocation9]   ;;  %s1802_s10 = scalar_lea.hbm %s2909_s5, 16 }
 0x463   : > { %1621 = dma.smem_to_hbm (%p1985_p2), %s1907_s7, 16, %s2908_s4, [#allocation6]  }
 0x464   : > { %p1803_p3 = scmp.ne.s32.totalorder %s2909_s5, %s1802_s10  ;;  %p1808_p11 = scmp.lt.u32.totalorder %s1802_s10, %s2909_s5 }
 0x466   : > { %p1804_p10 = pnand %p1803_p3, %p1985_p2 }
 0x468   : > { %p1805_p12 = pneg %p1804_p10 }
 0x46a   : > { %p1810_p8 = pnand %p1808_p11, %p1805_p12 }
 0x46c   : > { %1813 = shalt.err (!%p1810_p8)
}
 0x46d   : > { %s1908_s0 = smov [#allocation10]  }
 0x46e   : > { %1623 = dma.smem_to_hbm (%p1985_p2), %s1908_s0, 16, %s2909_s5, [#allocation11]  }
 0x46f   : > { %1847 = dma.done.wait (%p1985_p2), [#allocation6], 16  }
 0x470   : > { %1849 = vsyncadd (%p1985_p2), [#allocation6], 4294967280 }
 0x471   : > { %1851 = dma.done.wait (%p1985_p2), [#allocation11], 16  }
 0x472   : > { %1853 = vsyncadd (%p1985_p2), [#allocation11], 4294967280 }
 0x473   : > { %1349 = sfence }
 0x474 PF: > { %p1641_p13 = scmp.ge.s32.totalorder %s1892_s25, 2  ;;  %s1358_s28 = sand.u32 1, %s1864_s18  }
 0x475   : > { %p2930_p0 = scmp.ne.s32.totalorder %s2922_s8, 0  ;;  %s1359_s16 = scalar_lea.sflag [#allocation5], %s1358_s28 }
 0x477   : > { %p1631_p1 = pnand %p1641_p13, %p2930_p0 }
 0x479   : > { %1855 = dma.done.wait (!%p1631_p1), %s1359_s16, 64  }
 0x47a   : > { %1857 = vsyncadd (!%p1631_p1), %s1359_s16, 4294967232  ;;  %s1368_s17 = scalar_lea.sflag [#allocation8], %s1358_s28 }
 0x47b   : > { %1859 = dma.done.wait (!%p1631_p1), %s1368_s17, 16  }
 0x47c   : > { %1861 = vsyncadd (!%p1631_p1), %s1368_s17, 4294967280  ;;  %s24_s25 = sadd.s32 1, %s1892_s25   ;;  %s2931_s30 = sld [smem:[#allocation16_spill]] }
 0x47d   : > { %p21_p4 = scmp.ge.s32.totalorder %s24_s25, 6   ;;  %s2932_s11 = sld [smem:[#allocation17_spill]] }
 0x47e   : > { %s2933_s18 = smov %s1868_s19  ;;  %s2934_s19 = smov %s1872_s20 }
 0x47f   : > { %s2935_s20 = smov %s2014_s12  ;;  %s2936_s21 = smov %s1884_s23 }
 0x480   : > { %s2937_s22 = smov %s1888_s24  ;;  %23 = sbr.rel (!%p21_p4) target bundleno = 11 (0xb), region = 109 }
 0x482   : > { %s2938_s23 = smov %s2931_s30 }
 0x483   : > { %s2939_s24 = smov %s2932_s11 }
 0x487   :  { %1372 = vsyncpa [#allocation5], 1 }
 0x488   :  { %1374 = vsyncpa [#allocation5 + $0x1], 1 }
 0x489   :  { %1375 = vsyncpa [#allocation8], 1 }
 0x48a   :  { %1377 = vsyncpa [#allocation8 + $0x1], 1 }
 0x48b   :  { %1378 = vsyncpa [#allocation6], 1 }
 0x48c   :  { %1380 = vsyncpa [#allocation6 + $0x1], 1 }
 0x48d   :  { %1381 = vsyncpa [#allocation11], 1 }

</bundles_post_ra>
